<compile_context>
chip_gen: v7x
topology: tpu7x:2x2x1
jax: 0.10.0
libtpu: 0.0.40
codegen_flags: <defaults>
</compile_context>

<pallas_src>
import functools
import math

import numpy as np
import jax
import jax.numpy as jnp
from jax import lax
from jax.experimental import pallas as pl
from jax.experimental.pallas import tpu as pltpu

# ----------------------------- problem configuration -----------------------------
NODE_TYPES = ["player", "team"]
EDGE_TYPES = [
    ("player", "plays_for", "team"),
    ("team", "employs", "player"),
    ("player", "interacts", "player"),
]
NUM_NODES = {"player": 16, "team": 8}
IN_FEATS = {"player": 12, "team": 6}
HIDDEN = 32          # hidden_channels
OUT_CH = 5           # out_channels
HEADS = 4            # num_heads
LAYERS = 2           # num_layers
HEAD_DIM = HIDDEN // HEADS


# ----------------------------- in-kernel math helpers -----------------------------
def _erf_approx(x):
    # Abramowitz & Stegun 7.1.26, |abs err| <= 1.5e-7.  Used instead of lax.erf so the
    # exact-gelu epilogue is guaranteed to lower inside the Mosaic kernel.
    # TODO(synk): switch to lax.erf if/when its Pallas-TPU lowering is guaranteed.
    ax = jnp.abs(x)
    t = 1.0 / (1.0 + 0.3275911 * ax)
    poly = ((((1.061405429 * t - 1.453152027) * t + 1.421413741) * t
             - 0.284496736) * t + 0.254829592)
    y = 1.0 - poly * t * jnp.exp(-ax * ax)
    return jnp.where(x < 0.0, -y, y)


def _gelu_exact(x):
    # erf-based gelu (matches F.gelu default up to ~1e-7)
    return 0.5 * x * (1.0 + _erf_approx(x * (1.0 / math.sqrt(2.0))))


# ----------------------------- the fused Pallas kernel -----------------------------
def _hnn_fused_kernel(layout, slab_ref, skip_ref, xp_ref, xt_ref, out_ref):
    """Entire HNN forward in one invocation; all operands are VMEM/SMEM-resident."""
    F_, H = HIDDEN, HEADS

    def ld(name):
        r0, (r, c) = layout[name]           # static row range -> free view of the slab ref
        return slab_ref[r0:r0 + r, 0:c]

    x_in = {"player": xp_ref[...], "team": xt_ref[...]}

    # static per-destination masks (layer independent -> loaded once, reused by both layers)
    mstk = {t: ld(f"mstack_{t}") for t in NODE_TYPES}   # [H*Nd, S]  1/0 incoming-edge mask
    hcm = {t: ld(f"hcm_{t}") for t in NODE_TYPES}       # [H*Nd, F]  per-head column mask

    # 1) per-node-type input projection + relu
    h = {}
    for t in NODE_TYPES:
        y = jnp.dot(x_in[t], ld(f"lin_in_w_{t}"),
                    preferred_element_type=jnp.float32) + ld(f"lin_in_b_{t}")
        h[t] = jnp.maximum(y, 0.0)

    # 2) HGTConv layers (fully unrolled at trace time)
    for li in range(LAYERS):
        # Q projections (1/sqrt(D) pre-folded into the weights on the host)
        q = {}
        for t in NODE_TYPES:
            q[t] = jnp.dot(h[t], ld(f"L{li}_wq_{t}"),
                           preferred_element_type=jnp.float32) + ld(f"L{li}_bq_{t}")
        # K/V per edge type (k_rel*p_rel / v_rel pre-folded into the weights on the host)
        K_e, V_e = {}, {}
        for e, (src_t, _rel, _dst) in enumerate(EDGE_TYPES):
            K_e[e] = jnp.dot(h[src_t], ld(f"L{li}_wk_e{e}"),
                             preferred_element_type=jnp.float32) + ld(f"L{li}_bk_e{e}")
            V_e[e] = jnp.dot(h[src_t], ld(f"L{li}_wv_e{e}"),
                             preferred_element_type=jnp.float32) + ld(f"L{li}_bv_e{e}")

        new_h = {}
        for t_idx, dst_t in enumerate(NODE_TYPES):
            e_ids = [e for e, et in enumerate(EDGE_TYPES) if et[2] == dst_t]
            if not e_ids:
                continue   # node type is not a destination of any edge type (HGTConv drops it)
            Nd = NUM_NODES[dst_t]
            # all incoming sources concatenated across edge types (parts are 8/16 rows, so
            # every piece stays sublane-tile aligned)
            K_all = K_e[e_ids[0]] if len(e_ids) == 1 else jnp.concatenate(
                [K_e[e] for e in e_ids], axis=0)                              # [S, F]
            V_all = V_e[e_ids[0]] if len(e_ids) == 1 else jnp.concatenate(
                [V_e[e] for e in e_ids], axis=0)                              # [S, F]

            # Stack the per-head masked queries along sublanes: row h*Nd+n keeps only the
            # lanes of head h, so ONE matmul yields every head's scores.
            q_stack = jnp.concatenate([q[dst_t]] * H, axis=0) * hcm[dst_t]    # [H*Nd, F]
            s = lax.dot_general(q_stack, K_all, (((1,), (1,)), ((), ())),
                                preferred_element_type=jnp.float32)           # [H*Nd, S]

            # Softmax over all incoming edges of each (node, head) row.  A global row max is
            # a valid shift even over masked entries (scores are O(1): no over/underflow), so
            # no additive -1e30 bias is needed; the multiplicative mask zeroes masked entries.
            smax = jnp.max(s, axis=-1, keepdims=True)
            p = jnp.exp(s - smax) * mstk[dst_t]
            denom = jnp.sum(p, axis=-1, keepdims=True)
            alpha = p / jnp.where(denom > 0.0, denom, 1.0)     # rows with no edges -> 0

            # ONE matmul aggregates every head; keep each head's own column block and fold
            # the H sublane blocks back onto each other with static slices.
            agg_stack = jnp.dot(alpha, V_all,
                                preferred_element_type=jnp.float32) * hcm[dst_t]  # [H*Nd, F]
            agg = agg_stack[0:Nd, :]
            for hh in range(1, H):
                agg = agg + agg_stack[hh * Nd:(hh + 1) * Nd, :]

            # out_lin(gelu(agg)) and sigmoid-skip blend (skip gate pre-sigmoided, in SMEM)
            g = _gelu_exact(agg)
            a = jnp.dot(g, ld(f"L{li}_wout_{dst_t}"),
                        preferred_element_type=jnp.float32) + ld(f"L{li}_bout_{dst_t}")
            sk = skip_ref[li * len(NODE_TYPES) + t_idx]
            new_h[dst_t] = sk * a + (1.0 - sk) * h[dst_t]
        h = new_h

    # 3) final projection on 'player' nodes + softmax over dim=1 (eval-mode branch)
    logits = jnp.dot(h["player"], ld("lin_out_w"),
                     preferred_element_type=jnp.float32) + ld("lin_out_b")
    m = jnp.max(logits, axis=-1, keepdims=True)
    e = jnp.exp(logits - m)
    out_ref[...] = e / jnp.sum(e, axis=-1, keepdims=True)


# ----------------------------- one-time host-side preprocessing -----------------------------
def _np32(a):
    return np.asarray(a, dtype=np.float32)


def _block_diag_np(blocks):
    d = blocks[0].shape[0]
    out = np.zeros((len(blocks) * d, len(blocks) * d), np.float32)
    for i, b in enumerate(blocks):
        out[i * d:(i + 1) * d, i * d:(i + 1) * d] = b
    return out


class _SlabBuilder:
    """Packs many tiny 2-D operands into one lane-dense f32 [rows, 128] slab.

    Row ranges are static python metadata, so in-kernel reads are free static views of a
    single VMEM ref: one input DMA instead of ~60 sub-tile DMAs."""

    def __init__(self, width=128):
        self.width = width
        self.parts = []
        self.layout = {}
        self.cursor = 0

    def add(self, name, arr):
        arr = _np32(arr)
        if arr.ndim == 1:
            arr = arr.reshape(1, -1)
        r, c = arr.shape
        assert c <= self.width, (name, arr.shape)
        rp = ((r + 7) // 8) * 8                          # keep every item sublane aligned
        buf = np.zeros((rp, self.width), np.float32)
        buf[:r, :c] = arr
        self.layout[name] = (self.cursor, (r, c))
        self.parts.append(buf)
        self.cursor += rp

    def finalize(self):
        return np.concatenate(self.parts, axis=0), self.layout


def build_operands(params, masks):
    """One-time, host-side (numpy) preprocessing of parameters + static graph masks."""
    F_, H, D = HIDDEN, HEADS, HEAD_DIM
    sb = _SlabBuilder()

    for t in NODE_TYPES:
        sb.add(f"lin_in_w_{t}", params["lin_in"][t]["w"])
        sb.add(f"lin_in_b_{t}", params["lin_in"][t]["b"])
    sb.add("lin_out_w", params["lin_out"]["w"])
    sb.add("lin_out_b", params["lin_out"]["b"])

    # Per-destination incoming-edge mask (sources concatenated across edge types), pre-tiled
    # per head for the sublane-stacked attention layout, plus the per-head column mask.
    for dst_t in NODE_TYPES:
        parts = [_np32(masks[et]) for et in EDGE_TYPES if et[2] == dst_t]
        if not parts:
            continue
        m_all = parts[0] if len(parts) == 1 else np.concatenate(parts, axis=1)   # [Nd, S]
        sb.add(f"mstack_{dst_t}", np.tile(m_all, (H, 1)))                        # [H*Nd, S]
        Nd = NUM_NODES[dst_t]
        hcm = np.zeros((H * Nd, F_), np.float32)
        for hh in range(H):
            hcm[hh * Nd:(hh + 1) * Nd, hh * D:(hh + 1) * D] = 1.0
        sb.add(f"hcm_{dst_t}", hcm)                                              # [H*Nd, F]

    inv_sqrt_d = 1.0 / math.sqrt(D)
    for li, layer in enumerate(params["convs"]):
        for t in NODE_TYPES:
            w, b = _np32(layer["kqv"][t]["w"]), _np32(layer["kqv"][t]["b"])
            # fold the 1/sqrt(D) attention scale into Q (q only ever feeds the scores)
            sb.add(f"L{li}_wq_{t}", w[:, F_:2 * F_] * inv_sqrt_d)
            sb.add(f"L{li}_bq_{t}", b[F_:2 * F_] * inv_sqrt_d)
            sb.add(f"L{li}_wout_{t}", layer["out"][t]["w"])
            sb.add(f"L{li}_bout_{t}", layer["out"][t]["b"])
        k_rel = _np32(layer["k_rel"])
        v_rel = _np32(layer["v_rel"])
        p_rel = _np32(layer["p_rel"])
        for e, (src_t, _rel, _dst) in enumerate(EDGE_TYPES):
            w, b = _np32(layer["kqv"][src_t]["w"]), _np32(layer["kqv"][src_t]["b"])
            # fold the per-head relation transforms (and the p_rel prior) into K/V:
            #   (h @ Wk + bk) @ blockdiag(k_rel*p_rel) == h @ (Wk @ BD) + (bk @ BD)
            kbd = _block_diag_np([k_rel[e, hh] * p_rel[e, hh] for hh in range(H)])
            vbd = _block_diag_np([v_rel[e, hh] for hh in range(H)])
            sb.add(f"L{li}_wk_e{e}", w[:, :F_] @ kbd)
            sb.add(f"L{li}_bk_e{e}", b[:F_] @ kbd)
            sb.add(f"L{li}_wv_e{e}", w[:, 2 * F_:] @ vbd)
            sb.add(f"L{li}_bv_e{e}", b[2 * F_:] @ vbd)

    slab_np, layout = sb.finalize()
    # pre-sigmoided skip gates: true scalars -> SMEM
    skips = np.array(
        [1.0 / (1.0 + np.exp(-float(params["convs"][li]["skip"][t])))
         for li in range(LAYERS) for t in NODE_TYPES], dtype=np.float32)
    return jnp.asarray(slab_np), jnp.asarray(skips), layout


def make_hnn_forward(layout):
    """Builds the jitted hot-path callable: ONLY the grid-less pallas_call, no prep ops."""
    kernel = functools.partial(_hnn_fused_kernel, layout)
    call = pl.pallas_call(
        kernel,
        out_shape=jax.ShapeDtypeStruct((NUM_NODES["player"], OUT_CH), jnp.float32),
        in_specs=[
            pl.BlockSpec(memory_space=pltpu.MemorySpace.VMEM),   # packed param/mask slab
            pl.BlockSpec(memory_space=pltpu.MemorySpace.SMEM),   # pre-sigmoided skip gates
            pl.BlockSpec(memory_space=pltpu.MemorySpace.VMEM),   # x['player']
            pl.BlockSpec(memory_space=pltpu.MemorySpace.VMEM),   # x['team']
        ],
        out_specs=pl.BlockSpec(memory_space=pltpu.MemorySpace.VMEM),
    )
    return jax.jit(call)


# ----------------------------- pure-JAX reference (independent math path) -----------------------------
def hnn_forward_ref(params, x_dict, masks):
    H, F_, D = HEADS, HIDDEN, HEAD_DIM

    def lin(x, p, act="none"):
        y = x @ p["w"] + p["b"][None, :]
        if act == "relu":
            return jnp.maximum(y, 0.0)
        if act == "softmax":
            return jax.nn.softmax(y, axis=-1)
        return y

    h = {t: lin(x_dict[t], params["lin_in"][t], "relu") for t in NODE_TYPES}
    for layer in params["convs"]:
        kqv = {t: lin(h[t], layer["kqv"][t]) for t in NODE_TYPES}
        k = {t: kqv[t][:, :F_].reshape(-1, H, D) for t in NODE_TYPES}
        q = {t: kqv[t][:, F_:2 * F_].reshape(-1, H, D) for t in NODE_TYPES}
        v = {t: kqv[t][:, 2 * F_:].reshape(-1, H, D) for t in NODE_TYPES}
        new_h = {}
        for dst_t in NODE_TYPES:
            k_parts, v_parts, m_parts = [], [], []
            for e_idx, (src_t, rel, d_t) in enumerate(EDGE_TYPES):
                if d_t != dst_t:
                    continue
                k_src = jnp.transpose(k[src_t], (1, 0, 2))
                v_src = jnp.transpose(v[src_t], (1, 0, 2))
                k_rel = jnp.einsum("hnd,hde->hne", k_src, layer["k_rel"][e_idx])
                v_rel = jnp.einsum("hnd,hde->hne", v_src, layer["v_rel"][e_idx])
                k_rel = k_rel * layer["p_rel"][e_idx][:, None, None]
                k_parts.append(k_rel)
                v_parts.append(v_rel)
                m_parts.append(masks[(src_t, rel, d_t)])
            if not k_parts:
                continue
            K = jnp.concatenate(k_parts, axis=1)
            V = jnp.concatenate(v_parts, axis=1)
            M = jnp.concatenate(m_parts, axis=1)
            qh = jnp.transpose(q[dst_t], (1, 0, 2))
            s = jnp.einsum("hnd,hsd->hns", qh, K) / math.sqrt(D)
            s = jnp.where(M[None] > 0.5, s, -1e30)
            smax = jnp.max(s, axis=-1, keepdims=True)
            p = jnp.exp(s - smax) * M[None]
            denom = jnp.sum(p, axis=-1, keepdims=True)
            alpha = p / jnp.where(denom > 0.0, denom, 1.0)
            out = jnp.einsum("hns,hsd->hnd", alpha, V)
            agg = jnp.transpose(out, (1, 0, 2)).reshape(-1, F_)
            g = jax.nn.gelu(agg, approximate=False)
            a = lin(g, layer["out"][dst_t])
            al = jax.nn.sigmoid(layer["skip"][dst_t])
            new_h[dst_t] = al * a + (1.0 - al) * h[dst_t]
        h = new_h
    return lin(h["player"], params["lin_out"], "softmax")


# ----------------------------- deterministic parameters / inputs -----------------------------
def init_params(key):
    def nxt():
        nonlocal key
        key, sub = jax.random.split(key)
        return sub

    def lin(fin, fout):
        return {"w": 0.1 * jax.random.normal(nxt(), (fin, fout), jnp.float32),
                "b": 0.1 * jax.random.normal(nxt(), (fout,), jnp.float32)}

    params = {
        "lin_in": {t: lin(IN_FEATS[t], HIDDEN) for t in NODE_TYPES},
        "convs": [],
        "lin_out": lin(HIDDEN, OUT_CH),
    }
    for _ in range(LAYERS):
        layer = {
            "kqv": {t: lin(HIDDEN, 3 * HIDDEN) for t in NODE_TYPES},
            "out": {t: lin(HIDDEN, HIDDEN) for t in NODE_TYPES},
            "k_rel": 0.1 * jax.random.normal(nxt(), (len(EDGE_TYPES), HEADS, HEAD_DIM, HEAD_DIM), jnp.float32),
            "v_rel": 0.1 * jax.random.normal(nxt(), (len(EDGE_TYPES), HEADS, HEAD_DIM, HEAD_DIM), jnp.float32),
            "p_rel": 1.0 + 0.1 * jax.random.normal(nxt(), (len(EDGE_TYPES), HEADS), jnp.float32),
            "skip": {t: jax.random.normal(nxt(), (), jnp.float32) for t in NODE_TYPES},
        }
        params["convs"].append(layer)
    return params


def build_graph():
    npl, ntm = NUM_NODES["player"], NUM_NODES["team"]
    ei = {}
    src = np.arange(npl); dst = src % ntm
    ei[EDGE_TYPES[0]] = np.stack([src, dst])                               # player -> team
    ei[EDGE_TYPES[1]] = np.stack([dst, src])                               # team   -> player
    src2 = np.concatenate([np.arange(npl), np.arange(npl)])
    dst2 = np.concatenate([(np.arange(npl) + 1) % npl, (np.arange(npl) + 3) % npl])
    ei[EDGE_TYPES[2]] = np.stack([src2, dst2])                             # player -> player
    masks = {}
    for et, e in ei.items():
        s_t, _, d_t = et
        m = np.zeros((NUM_NODES[d_t], NUM_NODES[s_t]), np.float32)
        m[e[1], e[0]] = 1.0
        masks[et] = jnp.asarray(m)
    return ei, masks


# ----------------------------- main -----------------------------
if __name__ == "__main__":
    params = init_params(jax.random.PRNGKey(0))
    kx1, kx2 = jax.random.split(jax.random.PRNGKey(1))
    x_dict = {
        "player": jax.random.normal(kx1, (NUM_NODES["player"], IN_FEATS["player"]), jnp.float32),
        "team": jax.random.normal(kx2, (NUM_NODES["team"], IN_FEATS["team"]), jnp.float32),
    }
    edge_index_dict, masks = build_graph()

    # one-time parameter/graph preprocessing (hoisted off the per-call hot path)
    slab, skips, layout = build_operands(params, masks)
    forward = make_hnn_forward(layout)

    out = jax.block_until_ready(forward(slab, skips, x_dict["player"], x_dict["team"]))

    # pure-JAX reference, evaluated at 'highest' matmul precision
    with jax.default_matmul_precision("highest"):
        ref = jax.block_until_ready(hnn_forward_ref(params, x_dict, masks))

    assert out.shape == (NUM_NODES["player"], OUT_CH)
    assert bool(jnp.all(jnp.isfinite(out)))
    np.testing.assert_allclose(np.asarray(jnp.sum(out, axis=1)), 1.0, atol=1e-4)
    # kernel runs at Mosaic-default f32 matmul precision vs 'highest' reference
    np.testing.assert_allclose(np.asarray(out), np.asarray(ref), atol=3e-3, rtol=2e-2)

    print("KERNEL_OK")
</pallas_src>

<mosaic_0001>
module attributes {stable_mosaic.version = 11 : i64} {
  func.func @_hnn_fused_kernel(%arg0: memref<1072x128xf32, #tpu.memory_space<vmem>>, %arg1: memref<4xf32, #tpu.memory_space<smem>>, %arg2: memref<16x12xf32, #tpu.memory_space<vmem>>, %arg3: memref<8x6xf32, #tpu.memory_space<vmem>>, %arg4: memref<16x5xf32, #tpu.memory_space<vmem>>) attributes {dimension_semantics = [], scalar_prefetch = 0 : i64, scratch_operands = 0 : i64, tpu.core_type = #tpu.core_type<tc>} {
    %c0 = arith.constant 0 : index
    %c0_0 = arith.constant 0 : index
    %0 = vector.load %arg2[%c0, %c0_0] : memref<16x12xf32, #tpu.memory_space<vmem>>, vector<16x12xf32>
    %c0_1 = arith.constant 0 : index
    %c0_2 = arith.constant 0 : index
    %1 = vector.load %arg3[%c0_1, %c0_2] : memref<8x6xf32, #tpu.memory_space<vmem>>, vector<8x6xf32>
    %c80 = arith.constant 80 : index
    %c0_3 = arith.constant 0 : index
    %2 = vector.load %arg0[%c80, %c0_3] : memref<1072x128xf32, #tpu.memory_space<vmem>>, vector<64x24xf32>
    %c208 = arith.constant 208 : index
    %c0_4 = arith.constant 0 : index
    %3 = vector.load %arg0[%c208, %c0_4] : memref<1072x128xf32, #tpu.memory_space<vmem>>, vector<32x16xf32>
    %c144 = arith.constant 144 : index
    %c0_5 = arith.constant 0 : index
    %4 = vector.load %arg0[%c144, %c0_5] : memref<1072x128xf32, #tpu.memory_space<vmem>>, vector<64x32xf32>
    %c240 = arith.constant 240 : index
    %c0_6 = arith.constant 0 : index
    %5 = vector.load %arg0[%c240, %c0_6] : memref<1072x128xf32, #tpu.memory_space<vmem>>, vector<32x32xf32>
    %c0_7 = arith.constant 0 : index
    %c0_8 = arith.constant 0 : index
    %6 = vector.load %arg0[%c0_7, %c0_8] : memref<1072x128xf32, #tpu.memory_space<vmem>>, vector<12x32xf32>
    %cst = arith.constant dense<0.000000e+00> : vector<16x32xf32>
    %7 = tpu.matmul %0, %6, %cst {dimension_numbers = #tpu.dot_dimension_numbers<[1], [0], [0], [1], [0, 0, 1, 1], [], []>} : vector<16x12xf32>, vector<12x32xf32>, vector<16x32xf32> -> vector<16x32xf32>
    %c16 = arith.constant 16 : index
    %c0_9 = arith.constant 0 : index
    %8 = vector.load %arg0[%c16, %c0_9] : memref<1072x128xf32, #tpu.memory_space<vmem>>, vector<1x32xf32>
    %9 = vector.broadcast %8 : vector<1x32xf32> to vector<16x32xf32>
    %10 = arith.addf %7, %9 : vector<16x32xf32>
    %cst_10 = arith.constant 0.000000e+00 : f32
    %11 = vector.broadcast %cst_10 : f32 to vector<16x32xf32>
    %12 = arith.maximumf %10, %11 : vector<16x32xf32>
    %c24 = arith.constant 24 : index
    %c0_11 = arith.constant 0 : index
    %13 = vector.load %arg0[%c24, %c0_11] : memref<1072x128xf32, #tpu.memory_space<vmem>>, vector<6x32xf32>
    %cst_12 = arith.constant dense<0.000000e+00> : vector<8x32xf32>
    %14 = tpu.matmul %1, %13, %cst_12 {dimension_numbers = #tpu.dot_dimension_numbers<[1], [0], [0], [1], [0, 0, 1, 1], [], []>} : vector<8x6xf32>, vector<6x32xf32>, vector<8x32xf32> -> vector<8x32xf32>
    %c32 = arith.constant 32 : index
    %c0_13 = arith.constant 0 : index
    %15 = vector.load %arg0[%c32, %c0_13] : memref<1072x128xf32, #tpu.memory_space<vmem>>, vector<1x32xf32>
    %16 = vector.broadcast %15 : vector<1x32xf32> to vector<8x32xf32>
    %17 = arith.addf %14, %16 : vector<8x32xf32>
    %cst_14 = arith.constant 0.000000e+00 : f32
    %18 = vector.broadcast %cst_14 : f32 to vector<8x32xf32>
    %19 = arith.maximumf %17, %18 : vector<8x32xf32>
    %c272 = arith.constant 272 : index
    %c0_15 = arith.constant 0 : index
    %20 = vector.load %arg0[%c272, %c0_15] : memref<1072x128xf32, #tpu.memory_space<vmem>>, vector<32x32xf32>
    %cst_16 = arith.constant dense<0.000000e+00> : vector<16x32xf32>
    %21 = tpu.matmul %12, %20, %cst_16 {dimension_numbers = #tpu.dot_dimension_numbers<[1], [0], [0], [1], [0, 0, 1, 1], [], []>} : vector<16x32xf32>, vector<32x32xf32>, vector<16x32xf32> -> vector<16x32xf32>
    %c304 = arith.constant 304 : index
    %c0_17 = arith.constant 0 : index
    %22 = vector.load %arg0[%c304, %c0_17] : memref<1072x128xf32, #tpu.memory_space<vmem>>, vector<1x32xf32>
    %23 = vector.broadcast %22 : vector<1x32xf32> to vector<16x32xf32>
    %24 = arith.addf %21, %23 : vector<16x32xf32>
    %c352 = arith.constant 352 : index
    %c0_18 = arith.constant 0 : index
    %25 = vector.load %arg0[%c352, %c0_18] : memref<1072x128xf32, #tpu.memory_space<vmem>>, vector<32x32xf32>
    %cst_19 = arith.constant dense<0.000000e+00> : vector<8x32xf32>
    %26 = tpu.matmul %19, %25, %cst_19 {dimension_numbers = #tpu.dot_dimension_numbers<[1], [0], [0], [1], [0, 0, 1, 1], [], []>} : vector<8x32xf32>, vector<32x32xf32>, vector<8x32xf32> -> vector<8x32xf32>
    %c384 = arith.constant 384 : index
    %c0_20 = arith.constant 0 : index
    %27 = vector.load %arg0[%c384, %c0_20] : memref<1072x128xf32, #tpu.memory_space<vmem>>, vector<1x32xf32>
    %28 = vector.broadcast %27 : vector<1x32xf32> to vector<8x32xf32>
    %29 = arith.addf %26, %28 : vector<8x32xf32>
    %c432 = arith.constant 432 : index
    %c0_21 = arith.constant 0 : index
    %30 = vector.load %arg0[%c432, %c0_21] : memref<1072x128xf32, #tpu.memory_space<vmem>>, vector<32x32xf32>
    %cst_22 = arith.constant dense<0.000000e+00> : vector<16x32xf32>
    %31 = tpu.matmul %12, %30, %cst_22 {dimension_numbers = #tpu.dot_dimension_numbers<[1], [0], [0], [1], [0, 0, 1, 1], [], []>} : vector<16x32xf32>, vector<32x32xf32>, vector<16x32xf32> -> vector<16x32xf32>
    %c464 = arith.constant 464 : index
    %c0_23 = arith.constant 0 : index
    %32 = vector.load %arg0[%c464, %c0_23] : memref<1072x128xf32, #tpu.memory_space<vmem>>, vector<1x32xf32>
    %33 = vector.broadcast %32 : vector<1x32xf32> to vector<16x32xf32>
    %34 = arith.addf %31, %33 : vector<16x32xf32>
    %c472 = arith.constant 472 : index
    %c0_24 = arith.constant 0 : index
    %35 = vector.load %arg0[%c472, %c0_24] : memref<1072x128xf32, #tpu.memory_space<vmem>>, vector<32x32xf32>
    %cst_25 = arith.constant dense<0.000000e+00> : vector<16x32xf32>
    %36 = tpu.matmul %12, %35, %cst_25 {dimension_numbers = #tpu.dot_dimension_numbers<[1], [0], [0], [1], [0, 0, 1, 1], [], []>} : vector<16x32xf32>, vector<32x32xf32>, vector<16x32xf32> -> vector<16x32xf32>
    %c504 = arith.constant 504 : index
    %c0_26 = arith.constant 0 : index
    %37 = vector.load %arg0[%c504, %c0_26] : memref<1072x128xf32, #tpu.memory_space<vmem>>, vector<1x32xf32>
    %38 = vector.broadcast %37 : vector<1x32xf32> to vector<16x32xf32>
    %39 = arith.addf %36, %38 : vector<16x32xf32>
    %c512 = arith.constant 512 : index
    %c0_27 = arith.constant 0 : index
    %40 = vector.load %arg0[%c512, %c0_27] : memref<1072x128xf32, #tpu.memory_space<vmem>>, vector<32x32xf32>
    %cst_28 = arith.constant dense<0.000000e+00> : vector<8x32xf32>
    %41 = tpu.matmul %19, %40, %cst_28 {dimension_numbers = #tpu.dot_dimension_numbers<[1], [0], [0], [1], [0, 0, 1, 1], [], []>} : vector<8x32xf32>, vector<32x32xf32>, vector<8x32xf32> -> vector<8x32xf32>
    %c544 = arith.constant 544 : index
    %c0_29 = arith.constant 0 : index
    %42 = vector.load %arg0[%c544, %c0_29] : memref<1072x128xf32, #tpu.memory_space<vmem>>, vector<1x32xf32>
    %43 = vector.broadcast %42 : vector<1x32xf32> to vector<8x32xf32>
    %44 = arith.addf %41, %43 : vector<8x32xf32>
    %c552 = arith.constant 552 : index
    %c0_30 = arith.constant 0 : index
    %45 = vector.load %arg0[%c552, %c0_30] : memref<1072x128xf32, #tpu.memory_space<vmem>>, vector<32x32xf32>
    %cst_31 = arith.constant dense<0.000000e+00> : vector<8x32xf32>
    %46 = tpu.matmul %19, %45, %cst_31 {dimension_numbers = #tpu.dot_dimension_numbers<[1], [0], [0], [1], [0, 0, 1, 1], [], []>} : vector<8x32xf32>, vector<32x32xf32>, vector<8x32xf32> -> vector<8x32xf32>
    %c584 = arith.constant 584 : index
    %c0_32 = arith.constant 0 : index
    %47 = vector.load %arg0[%c584, %c0_32] : memref<1072x128xf32, #tpu.memory_space<vmem>>, vector<1x32xf32>
    %48 = vector.broadcast %47 : vector<1x32xf32> to vector<8x32xf32>
    %49 = arith.addf %46, %48 : vector<8x32xf32>
    %c592 = arith.constant 592 : index
    %c0_33 = arith.constant 0 : index
    %50 = vector.load %arg0[%c592, %c0_33] : memref<1072x128xf32, #tpu.memory_space<vmem>>, vector<32x32xf32>
    %cst_34 = arith.constant dense<0.000000e+00> : vector<16x32xf32>
    %51 = tpu.matmul %12, %50, %cst_34 {dimension_numbers = #tpu.dot_dimension_numbers<[1], [0], [0], [1], [0, 0, 1, 1], [], []>} : vector<16x32xf32>, vector<32x32xf32>, vector<16x32xf32> -> vector<16x32xf32>
    %c624 = arith.constant 624 : index
    %c0_35 = arith.constant 0 : index
    %52 = vector.load %arg0[%c624, %c0_35] : memref<1072x128xf32, #tpu.memory_space<vmem>>, vector<1x32xf32>
    %53 = vector.broadcast %52 : vector<1x32xf32> to vector<16x32xf32>
    %54 = arith.addf %51, %53 : vector<16x32xf32>
    %c632 = arith.constant 632 : index
    %c0_36 = arith.constant 0 : index
    %55 = vector.load %arg0[%c632, %c0_36] : memref<1072x128xf32, #tpu.memory_space<vmem>>, vector<32x32xf32>
    %cst_37 = arith.constant dense<0.000000e+00> : vector<16x32xf32>
    %56 = tpu.matmul %12, %55, %cst_37 {dimension_numbers = #tpu.dot_dimension_numbers<[1], [0], [0], [1], [0, 0, 1, 1], [], []>} : vector<16x32xf32>, vector<32x32xf32>, vector<16x32xf32> -> vector<16x32xf32>
    %c664 = arith.constant 664 : index
    %c0_38 = arith.constant 0 : index
    %57 = vector.load %arg0[%c664, %c0_38] : memref<1072x128xf32, #tpu.memory_space<vmem>>, vector<1x32xf32>
    %58 = vector.broadcast %57 : vector<1x32xf32> to vector<16x32xf32>
    %59 = arith.addf %56, %58 : vector<16x32xf32>
    %60 = tpu.concatenate %44, %54 in 0 : vector<8x32xf32>, vector<16x32xf32> -> vector<24x32xf32>
    %61 = tpu.concatenate %49, %59 in 0 : vector<8x32xf32>, vector<16x32xf32> -> vector<24x32xf32>
    %62 = tpu.concatenate %24, %24, %24, %24 in 0 : vector<16x32xf32>, vector<16x32xf32>, vector<16x32xf32>, vector<16x32xf32> -> vector<64x32xf32>
    %63 = arith.mulf %62, %4 : vector<64x32xf32>
    %cst_39 = arith.constant dense<0.000000e+00> : vector<64x24xf32>
    %64 = tpu.matmul %63, %60, %cst_39 {dimension_numbers = #tpu.dot_dimension_numbers<[1], [1], [0], [0], [0, 0, 1, 0], [], []>} : vector<64x32xf32>, vector<24x32xf32>, vector<64x24xf32> -> vector<64x24xf32>
    %cst_40 = arith.constant dense<0xFF800000> : vector<64xf32>
    %65 = vector.multi_reduction <maximumf>, %64, %cst_40 [1] : vector<64x24xf32> to vector<64xf32>
    %66 = vector.shape_cast %65 : vector<64xf32> to vector<64x1xf32>
    %67 = vector.broadcast %66 : vector<64x1xf32> to vector<64x24xf32>
    %68 = arith.subf %64, %67 : vector<64x24xf32>
    %69 = math.exp %68 : vector<64x24xf32>
    %70 = arith.mulf %69, %2 : vector<64x24xf32>
    %cst_41 = arith.constant dense<0.000000e+00> : vector<64xf32>
    %71 = vector.multi_reduction <add>, %70, %cst_41 [1] : vector<64x24xf32> to vector<64xf32>
    %72 = vector.shape_cast %71 : vector<64xf32> to vector<64x1xf32>
    %cst_42 = arith.constant 0.000000e+00 : f32
    %73 = vector.broadcast %cst_42 : f32 to vector<64x1xf32>
    %74 = arith.cmpf ogt, %72, %73 : vector<64x1xf32>
    %cst_43 = arith.constant 1.000000e+00 : f32
    %75 = vector.broadcast %cst_43 : f32 to vector<64x1xf32>
    %76 = arith.select %74, %72, %75 : vector<64x1xi1>, vector<64x1xf32>
    %77 = vector.broadcast %76 : vector<64x1xf32> to vector<64x24xf32>
    %78 = arith.divf %70, %77 : vector<64x24xf32>
    %cst_44 = arith.constant dense<0.000000e+00> : vector<64x32xf32>
    %79 = tpu.matmul %78, %61, %cst_44 {dimension_numbers = #tpu.dot_dimension_numbers<[1], [0], [0], [1], [0, 0, 1, 1], [], []>} : vector<64x24xf32>, vector<24x32xf32>, vector<64x32xf32> -> vector<64x32xf32>
    %80 = arith.mulf %79, %4 : vector<64x32xf32>
    %81 = vector.extract_strided_slice %80 {offsets = [0, 0], sizes = [16, 32], strides = [1, 1]} : vector<64x32xf32> to vector<16x32xf32>
    %82 = vector.extract_strided_slice %80 {offsets = [16, 0], sizes = [16, 32], strides = [1, 1]} : vector<64x32xf32> to vector<16x32xf32>
    %83 = arith.addf %81, %82 : vector<16x32xf32>
    %84 = vector.extract_strided_slice %80 {offsets = [32, 0], sizes = [16, 32], strides = [1, 1]} : vector<64x32xf32> to vector<16x32xf32>
    %85 = arith.addf %83, %84 : vector<16x32xf32>
    %86 = vector.extract_strided_slice %80 {offsets = [48, 0], sizes = [16, 32], strides = [1, 1]} : vector<64x32xf32> to vector<16x32xf32>
    %87 = arith.addf %85, %86 : vector<16x32xf32>
    %cst_45 = arith.constant 5.000000e-01 : f32
    %88 = vector.broadcast %cst_45 : f32 to vector<16x32xf32>
    %89 = arith.mulf %88, %87 : vector<16x32xf32>
    %cst_46 = arith.constant 0.707106769 : f32
    %90 = vector.broadcast %cst_46 : f32 to vector<16x32xf32>
    %91 = arith.mulf %87, %90 : vector<16x32xf32>
    %92 = math.absf %91 : vector<16x32xf32>
    %cst_47 = arith.constant 0.327591091 : f32
    %93 = vector.broadcast %cst_47 : f32 to vector<16x32xf32>
    %94 = arith.mulf %93, %92 : vector<16x32xf32>
    %cst_48 = arith.constant 1.000000e+00 : f32
    %95 = vector.broadcast %cst_48 : f32 to vector<16x32xf32>
    %96 = arith.addf %95, %94 : vector<16x32xf32>
    %cst_49 = arith.constant 1.000000e+00 : f32
    %97 = vector.broadcast %cst_49 : f32 to vector<16x32xf32>
    %98 = arith.divf %97, %96 : vector<16x32xf32>
    %cst_50 = arith.constant 1.06140542 : f32
    %99 = vector.broadcast %cst_50 : f32 to vector<16x32xf32>
    %100 = arith.mulf %99, %98 : vector<16x32xf32>
    %cst_51 = arith.constant 1.45315206 : f32
    %101 = vector.broadcast %cst_51 : f32 to vector<16x32xf32>
    %102 = arith.subf %100, %101 : vector<16x32xf32>
    %103 = arith.mulf %102, %98 : vector<16x32xf32>
    %cst_52 = arith.constant 1.42141378 : f32
    %104 = vector.broadcast %cst_52 : f32 to vector<16x32xf32>
    %105 = arith.addf %103, %104 : vector<16x32xf32>
    %106 = arith.mulf %105, %98 : vector<16x32xf32>
    %cst_53 = arith.constant 0.284496725 : f32
    %107 = vector.broadcast %cst_53 : f32 to vector<16x32xf32>
    %108 = arith.subf %106, %107 : vector<16x32xf32>
    %109 = arith.mulf %108, %98 : vector<16x32xf32>
    %cst_54 = arith.constant 0.254829586 : f32
    %110 = vector.broadcast %cst_54 : f32 to vector<16x32xf32>
    %111 = arith.addf %109, %110 : vector<16x32xf32>
    %112 = arith.mulf %111, %98 : vector<16x32xf32>
    %cst_55 = arith.constant 0.000000e+00 : f32
    %113 = vector.broadcast %cst_55 : f32 to vector<16x32xf32>
    %114 = arith.subf %113, %92 : vector<16x32xf32>
    %115 = arith.mulf %114, %92 : vector<16x32xf32>
    %116 = math.exp %115 : vector<16x32xf32>
    %117 = arith.mulf %112, %116 : vector<16x32xf32>
    %cst_56 = arith.constant 1.000000e+00 : f32
    %118 = vector.broadcast %cst_56 : f32 to vector<16x32xf32>
    %119 = arith.subf %118, %117 : vector<16x32xf32>
    %cst_57 = arith.constant 0.000000e+00 : f32
    %120 = vector.broadcast %cst_57 : f32 to vector<16x32xf32>
    %121 = arith.cmpf olt, %91, %120 : vector<16x32xf32>
    %cst_58 = arith.constant 0.000000e+00 : f32
    %122 = vector.broadcast %cst_58 : f32 to vector<16x32xf32>
    %123 = arith.subf %122, %119 : vector<16x32xf32>
    %124 = arith.select %121, %123, %119 : vector<16x32xi1>, vector<16x32xf32>
    %cst_59 = arith.constant 1.000000e+00 : f32
    %125 = vector.broadcast %cst_59 : f32 to vector<16x32xf32>
    %126 = arith.addf %125, %124 : vector<16x32xf32>
    %127 = arith.mulf %89, %126 : vector<16x32xf32>
    %c312 = arith.constant 312 : index
    %c0_60 = arith.constant 0 : index
    %128 = vector.load %arg0[%c312, %c0_60] : memref<1072x128xf32, #tpu.memory_space<vmem>>, vector<32x32xf32>
    %cst_61 = arith.constant dense<0.000000e+00> : vector<16x32xf32>
    %129 = tpu.matmul %127, %128, %cst_61 {dimension_numbers = #tpu.dot_dimension_numbers<[1], [0], [0], [1], [0, 0, 1, 1], [], []>} : vector<16x32xf32>, vector<32x32xf32>, vector<16x32xf32> -> vector<16x32xf32>
    %c344 = arith.constant 344 : index
    %c0_62 = arith.constant 0 : index
    %130 = vector.load %arg0[%c344, %c0_62] : memref<1072x128xf32, #tpu.memory_space<vmem>>, vector<1x32xf32>
    %131 = vector.broadcast %130 : vector<1x32xf32> to vector<16x32xf32>
    %132 = arith.addf %129, %131 : vector<16x32xf32>
    %c0_63 = arith.constant 0 : index
    %133 = memref.load %arg1[%c0_63] : memref<4xf32, #tpu.memory_space<smem>>
    %134 = vector.broadcast %133 : f32 to vector<16x32xf32>
    %135 = arith.mulf %134, %132 : vector<16x32xf32>
    %cst_64 = arith.constant 1.000000e+00 : f32
    %136 = arith.subf %cst_64, %133 : f32
    %137 = vector.broadcast %136 : f32 to vector<16x32xf32>
    %138 = arith.mulf %137, %12 : vector<16x32xf32>
    %139 = arith.addf %135, %138 : vector<16x32xf32>
    %140 = tpu.concatenate %29, %29, %29, %29 in 0 : vector<8x32xf32>, vector<8x32xf32>, vector<8x32xf32>, vector<8x32xf32> -> vector<32x32xf32>
    %141 = arith.mulf %140, %5 : vector<32x32xf32>
    %cst_65 = arith.constant dense<0.000000e+00> : vector<32x16xf32>
    %142 = tpu.matmul %141, %34, %cst_65 {dimension_numbers = #tpu.dot_dimension_numbers<[1], [1], [0], [0], [0, 0, 1, 0], [], []>} : vector<32x32xf32>, vector<16x32xf32>, vector<32x16xf32> -> vector<32x16xf32>
    %cst_66 = arith.constant dense<0xFF800000> : vector<32xf32>
    %143 = vector.multi_reduction <maximumf>, %142, %cst_66 [1] : vector<32x16xf32> to vector<32xf32>
    %144 = vector.shape_cast %143 : vector<32xf32> to vector<32x1xf32>
    %145 = vector.broadcast %144 : vector<32x1xf32> to vector<32x16xf32>
    %146 = arith.subf %142, %145 : vector<32x16xf32>
    %147 = math.exp %146 : vector<32x16xf32>
    %148 = arith.mulf %147, %3 : vector<32x16xf32>
    %cst_67 = arith.constant dense<0.000000e+00> : vector<32xf32>
    %149 = vector.multi_reduction <add>, %148, %cst_67 [1] : vector<32x16xf32> to vector<32xf32>
    %150 = vector.shape_cast %149 : vector<32xf32> to vector<32x1xf32>
    %cst_68 = arith.constant 0.000000e+00 : f32
    %151 = vector.broadcast %cst_68 : f32 to vector<32x1xf32>
    %152 = arith.cmpf ogt, %150, %151 : vector<32x1xf32>
    %cst_69 = arith.constant 1.000000e+00 : f32
    %153 = vector.broadcast %cst_69 : f32 to vector<32x1xf32>
    %154 = arith.select %152, %150, %153 : vector<32x1xi1>, vector<32x1xf32>
    %155 = vector.broadcast %154 : vector<32x1xf32> to vector<32x16xf32>
    %156 = arith.divf %148, %155 : vector<32x16xf32>
    %cst_70 = arith.constant dense<0.000000e+00> : vector<32x32xf32>
    %157 = tpu.matmul %156, %39, %cst_70 {dimension_numbers = #tpu.dot_dimension_numbers<[1], [0], [0], [1], [0, 0, 1, 1], [], []>} : vector<32x16xf32>, vector<16x32xf32>, vector<32x32xf32> -> vector<32x32xf32>
    %158 = arith.mulf %157, %5 : vector<32x32xf32>
    %159 = vector.extract_strided_slice %158 {offsets = [0, 0], sizes = [8, 32], strides = [1, 1]} : vector<32x32xf32> to vector<8x32xf32>
    %160 = vector.extract_strided_slice %158 {offsets = [8, 0], sizes = [8, 32], strides = [1, 1]} : vector<32x32xf32> to vector<8x32xf32>
    %161 = arith.addf %159, %160 : vector<8x32xf32>
    %162 = vector.extract_strided_slice %158 {offsets = [16, 0], sizes = [8, 32], strides = [1, 1]} : vector<32x32xf32> to vector<8x32xf32>
    %163 = arith.addf %161, %162 : vector<8x32xf32>
    %164 = vector.extract_strided_slice %158 {offsets = [24, 0], sizes = [8, 32], strides = [1, 1]} : vector<32x32xf32> to vector<8x32xf32>
    %165 = arith.addf %163, %164 : vector<8x32xf32>
    %cst_71 = arith.constant 5.000000e-01 : f32
    %166 = vector.broadcast %cst_71 : f32 to vector<8x32xf32>
    %167 = arith.mulf %166, %165 : vector<8x32xf32>
    %cst_72 = arith.constant 0.707106769 : f32
    %168 = vector.broadcast %cst_72 : f32 to vector<8x32xf32>
    %169 = arith.mulf %165, %168 : vector<8x32xf32>
    %170 = math.absf %169 : vector<8x32xf32>
    %cst_73 = arith.constant 0.327591091 : f32
    %171 = vector.broadcast %cst_73 : f32 to vector<8x32xf32>
    %172 = arith.mulf %171, %170 : vector<8x32xf32>
    %cst_74 = arith.constant 1.000000e+00 : f32
    %173 = vector.broadcast %cst_74 : f32 to vector<8x32xf32>
    %174 = arith.addf %173, %172 : vector<8x32xf32>
    %cst_75 = arith.constant 1.000000e+00 : f32
    %175 = vector.broadcast %cst_75 : f32 to vector<8x32xf32>
    %176 = arith.divf %175, %174 : vector<8x32xf32>
    %cst_76 = arith.constant 1.06140542 : f32
    %177 = vector.broadcast %cst_76 : f32 to vector<8x32xf32>
    %178 = arith.mulf %177, %176 : vector<8x32xf32>
    %cst_77 = arith.constant 1.45315206 : f32
    %179 = vector.broadcast %cst_77 : f32 to vector<8x32xf32>
    %180 = arith.subf %178, %179 : vector<8x32xf32>
    %181 = arith.mulf %180, %176 : vector<8x32xf32>
    %cst_78 = arith.constant 1.42141378 : f32
    %182 = vector.broadcast %cst_78 : f32 to vector<8x32xf32>
    %183 = arith.addf %181, %182 : vector<8x32xf32>
    %184 = arith.mulf %183, %176 : vector<8x32xf32>
    %cst_79 = arith.constant 0.284496725 : f32
    %185 = vector.broadcast %cst_79 : f32 to vector<8x32xf32>
    %186 = arith.subf %184, %185 : vector<8x32xf32>
    %187 = arith.mulf %186, %176 : vector<8x32xf32>
    %cst_80 = arith.constant 0.254829586 : f32
    %188 = vector.broadcast %cst_80 : f32 to vector<8x32xf32>
    %189 = arith.addf %187, %188 : vector<8x32xf32>
    %190 = arith.mulf %189, %176 : vector<8x32xf32>
    %cst_81 = arith.constant 0.000000e+00 : f32
    %191 = vector.broadcast %cst_81 : f32 to vector<8x32xf32>
    %192 = arith.subf %191, %170 : vector<8x32xf32>
    %193 = arith.mulf %192, %170 : vector<8x32xf32>
    %194 = math.exp %193 : vector<8x32xf32>
    %195 = arith.mulf %190, %194 : vector<8x32xf32>
    %cst_82 = arith.constant 1.000000e+00 : f32
    %196 = vector.broadcast %cst_82 : f32 to vector<8x32xf32>
    %197 = arith.subf %196, %195 : vector<8x32xf32>
    %cst_83 = arith.constant 0.000000e+00 : f32
    %198 = vector.broadcast %cst_83 : f32 to vector<8x32xf32>
    %199 = arith.cmpf olt, %169, %198 : vector<8x32xf32>
    %cst_84 = arith.constant 0.000000e+00 : f32
    %200 = vector.broadcast %cst_84 : f32 to vector<8x32xf32>
    %201 = arith.subf %200, %197 : vector<8x32xf32>
    %202 = arith.select %199, %201, %197 : vector<8x32xi1>, vector<8x32xf32>
    %cst_85 = arith.constant 1.000000e+00 : f32
    %203 = vector.broadcast %cst_85 : f32 to vector<8x32xf32>
    %204 = arith.addf %203, %202 : vector<8x32xf32>
    %205 = arith.mulf %167, %204 : vector<8x32xf32>
    %c392 = arith.constant 392 : index
    %c0_86 = arith.constant 0 : index
    %206 = vector.load %arg0[%c392, %c0_86] : memref<1072x128xf32, #tpu.memory_space<vmem>>, vector<32x32xf32>
    %cst_87 = arith.constant dense<0.000000e+00> : vector<8x32xf32>
    %207 = tpu.matmul %205, %206, %cst_87 {dimension_numbers = #tpu.dot_dimension_numbers<[1], [0], [0], [1], [0, 0, 1, 1], [], []>} : vector<8x32xf32>, vector<32x32xf32>, vector<8x32xf32> -> vector<8x32xf32>
    %c424 = arith.constant 424 : index
    %c0_88 = arith.constant 0 : index
    %208 = vector.load %arg0[%c424, %c0_88] : memref<1072x128xf32, #tpu.memory_space<vmem>>, vector<1x32xf32>
    %209 = vector.broadcast %208 : vector<1x32xf32> to vector<8x32xf32>
    %210 = arith.addf %207, %209 : vector<8x32xf32>
    %c1 = arith.constant 1 : index
    %211 = memref.load %arg1[%c1] : memref<4xf32, #tpu.memory_space<smem>>
    %212 = vector.broadcast %211 : f32 to vector<8x32xf32>
    %213 = arith.mulf %212, %210 : vector<8x32xf32>
    %cst_89 = arith.constant 1.000000e+00 : f32
    %214 = arith.subf %cst_89, %211 : f32
    %215 = vector.broadcast %214 : f32 to vector<8x32xf32>
    %216 = arith.mulf %215, %19 : vector<8x32xf32>
    %217 = arith.addf %213, %216 : vector<8x32xf32>
    %c672 = arith.constant 672 : index
    %c0_90 = arith.constant 0 : index
    %218 = vector.load %arg0[%c672, %c0_90] : memref<1072x128xf32, #tpu.memory_space<vmem>>, vector<32x32xf32>
    %cst_91 = arith.constant dense<0.000000e+00> : vector<16x32xf32>
    %219 = tpu.matmul %139, %218, %cst_91 {dimension_numbers = #tpu.dot_dimension_numbers<[1], [0], [0], [1], [0, 0, 1, 1], [], []>} : vector<16x32xf32>, vector<32x32xf32>, vector<16x32xf32> -> vector<16x32xf32>
    %c704 = arith.constant 704 : index
    %c0_92 = arith.constant 0 : index
    %220 = vector.load %arg0[%c704, %c0_92] : memref<1072x128xf32, #tpu.memory_space<vmem>>, vector<1x32xf32>
    %221 = vector.broadcast %220 : vector<1x32xf32> to vector<16x32xf32>
    %222 = arith.addf %219, %221 : vector<16x32xf32>
    %c912 = arith.constant 912 : index
    %c0_93 = arith.constant 0 : index
    %223 = vector.load %arg0[%c912, %c0_93] : memref<1072x128xf32, #tpu.memory_space<vmem>>, vector<32x32xf32>
    %cst_94 = arith.constant dense<0.000000e+00> : vector<8x32xf32>
    %224 = tpu.matmul %217, %223, %cst_94 {dimension_numbers = #tpu.dot_dimension_numbers<[1], [0], [0], [1], [0, 0, 1, 1], [], []>} : vector<8x32xf32>, vector<32x32xf32>, vector<8x32xf32> -> vector<8x32xf32>
    %c944 = arith.constant 944 : index
    %c0_95 = arith.constant 0 : index
    %225 = vector.load %arg0[%c944, %c0_95] : memref<1072x128xf32, #tpu.memory_space<vmem>>, vector<1x32xf32>
    %226 = vector.broadcast %225 : vector<1x32xf32> to vector<8x32xf32>
    %227 = arith.addf %224, %226 : vector<8x32xf32>
    %c952 = arith.constant 952 : index
    %c0_96 = arith.constant 0 : index
    %228 = vector.load %arg0[%c952, %c0_96] : memref<1072x128xf32, #tpu.memory_space<vmem>>, vector<32x32xf32>
    %cst_97 = arith.constant dense<0.000000e+00> : vector<8x32xf32>
    %229 = tpu.matmul %217, %228, %cst_97 {dimension_numbers = #tpu.dot_dimension_numbers<[1], [0], [0], [1], [0, 0, 1, 1], [], []>} : vector<8x32xf32>, vector<32x32xf32>, vector<8x32xf32> -> vector<8x32xf32>
    %c984 = arith.constant 984 : index
    %c0_98 = arith.constant 0 : index
    %230 = vector.load %arg0[%c984, %c0_98] : memref<1072x128xf32, #tpu.memory_space<vmem>>, vector<1x32xf32>
    %231 = vector.broadcast %230 : vector<1x32xf32> to vector<8x32xf32>
    %232 = arith.addf %229, %231 : vector<8x32xf32>
    %c992 = arith.constant 992 : index
    %c0_99 = arith.constant 0 : index
    %233 = vector.load %arg0[%c992, %c0_99] : memref<1072x128xf32, #tpu.memory_space<vmem>>, vector<32x32xf32>
    %cst_100 = arith.constant dense<0.000000e+00> : vector<16x32xf32>
    %234 = tpu.matmul %139, %233, %cst_100 {dimension_numbers = #tpu.dot_dimension_numbers<[1], [0], [0], [1], [0, 0, 1, 1], [], []>} : vector<16x32xf32>, vector<32x32xf32>, vector<16x32xf32> -> vector<16x32xf32>
    %c1024 = arith.constant 1024 : index
    %c0_101 = arith.constant 0 : index
    %235 = vector.load %arg0[%c1024, %c0_101] : memref<1072x128xf32, #tpu.memory_space<vmem>>, vector<1x32xf32>
    %236 = vector.broadcast %235 : vector<1x32xf32> to vector<16x32xf32>
    %237 = arith.addf %234, %236 : vector<16x32xf32>
    %c1032 = arith.constant 1032 : index
    %c0_102 = arith.constant 0 : index
    %238 = vector.load %arg0[%c1032, %c0_102] : memref<1072x128xf32, #tpu.memory_space<vmem>>, vector<32x32xf32>
    %cst_103 = arith.constant dense<0.000000e+00> : vector<16x32xf32>
    %239 = tpu.matmul %139, %238, %cst_103 {dimension_numbers = #tpu.dot_dimension_numbers<[1], [0], [0], [1], [0, 0, 1, 1], [], []>} : vector<16x32xf32>, vector<32x32xf32>, vector<16x32xf32> -> vector<16x32xf32>
    %c1064 = arith.constant 1064 : index
    %c0_104 = arith.constant 0 : index
    %240 = vector.load %arg0[%c1064, %c0_104] : memref<1072x128xf32, #tpu.memory_space<vmem>>, vector<1x32xf32>
    %241 = vector.broadcast %240 : vector<1x32xf32> to vector<16x32xf32>
    %242 = arith.addf %239, %241 : vector<16x32xf32>
    %243 = tpu.concatenate %227, %237 in 0 : vector<8x32xf32>, vector<16x32xf32> -> vector<24x32xf32>
    %244 = tpu.concatenate %232, %242 in 0 : vector<8x32xf32>, vector<16x32xf32> -> vector<24x32xf32>
    %245 = tpu.concatenate %222, %222, %222, %222 in 0 : vector<16x32xf32>, vector<16x32xf32>, vector<16x32xf32>, vector<16x32xf32> -> vector<64x32xf32>
    %246 = arith.mulf %245, %4 : vector<64x32xf32>
    %cst_105 = arith.constant dense<0.000000e+00> : vector<64x24xf32>
    %247 = tpu.matmul %246, %243, %cst_105 {dimension_numbers = #tpu.dot_dimension_numbers<[1], [1], [0], [0], [0, 0, 1, 0], [], []>} : vector<64x32xf32>, vector<24x32xf32>, vector<64x24xf32> -> vector<64x24xf32>
    %cst_106 = arith.constant dense<0xFF800000> : vector<64xf32>
    %248 = vector.multi_reduction <maximumf>, %247, %cst_106 [1] : vector<64x24xf32> to vector<64xf32>
    %249 = vector.shape_cast %248 : vector<64xf32> to vector<64x1xf32>
    %250 = vector.broadcast %249 : vector<64x1xf32> to vector<64x24xf32>
    %251 = arith.subf %247, %250 : vector<64x24xf32>
    %252 = math.exp %251 : vector<64x24xf32>
    %253 = arith.mulf %252, %2 : vector<64x24xf32>
    %cst_107 = arith.constant dense<0.000000e+00> : vector<64xf32>
    %254 = vector.multi_reduction <add>, %253, %cst_107 [1] : vector<64x24xf32> to vector<64xf32>
    %255 = vector.shape_cast %254 : vector<64xf32> to vector<64x1xf32>
    %cst_108 = arith.constant 0.000000e+00 : f32
    %256 = vector.broadcast %cst_108 : f32 to vector<64x1xf32>
    %257 = arith.cmpf ogt, %255, %256 : vector<64x1xf32>
    %cst_109 = arith.constant 1.000000e+00 : f32
    %258 = vector.broadcast %cst_109 : f32 to vector<64x1xf32>
    %259 = arith.select %257, %255, %258 : vector<64x1xi1>, vector<64x1xf32>
    %260 = vector.broadcast %259 : vector<64x1xf32> to vector<64x24xf32>
    %261 = arith.divf %253, %260 : vector<64x24xf32>
    %cst_110 = arith.constant dense<0.000000e+00> : vector<64x32xf32>
    %262 = tpu.matmul %261, %244, %cst_110 {dimension_numbers = #tpu.dot_dimension_numbers<[1], [0], [0], [1], [0, 0, 1, 1], [], []>} : vector<64x24xf32>, vector<24x32xf32>, vector<64x32xf32> -> vector<64x32xf32>
    %263 = arith.mulf %262, %4 : vector<64x32xf32>
    %264 = vector.extract_strided_slice %263 {offsets = [0, 0], sizes = [16, 32], strides = [1, 1]} : vector<64x32xf32> to vector<16x32xf32>
    %265 = vector.extract_strided_slice %263 {offsets = [16, 0], sizes = [16, 32], strides = [1, 1]} : vector<64x32xf32> to vector<16x32xf32>
    %266 = arith.addf %264, %265 : vector<16x32xf32>
    %267 = vector.extract_strided_slice %263 {offsets = [32, 0], sizes = [16, 32], strides = [1, 1]} : vector<64x32xf32> to vector<16x32xf32>
    %268 = arith.addf %266, %267 : vector<16x32xf32>
    %269 = vector.extract_strided_slice %263 {offsets = [48, 0], sizes = [16, 32], strides = [1, 1]} : vector<64x32xf32> to vector<16x32xf32>
    %270 = arith.addf %268, %269 : vector<16x32xf32>
    %cst_111 = arith.constant 5.000000e-01 : f32
    %271 = vector.broadcast %cst_111 : f32 to vector<16x32xf32>
    %272 = arith.mulf %271, %270 : vector<16x32xf32>
    %cst_112 = arith.constant 0.707106769 : f32
    %273 = vector.broadcast %cst_112 : f32 to vector<16x32xf32>
    %274 = arith.mulf %270, %273 : vector<16x32xf32>
    %275 = math.absf %274 : vector<16x32xf32>
    %cst_113 = arith.constant 0.327591091 : f32
    %276 = vector.broadcast %cst_113 : f32 to vector<16x32xf32>
    %277 = arith.mulf %276, %275 : vector<16x32xf32>
    %cst_114 = arith.constant 1.000000e+00 : f32
    %278 = vector.broadcast %cst_114 : f32 to vector<16x32xf32>
    %279 = arith.addf %278, %277 : vector<16x32xf32>
    %cst_115 = arith.constant 1.000000e+00 : f32
    %280 = vector.broadcast %cst_115 : f32 to vector<16x32xf32>
    %281 = arith.divf %280, %279 : vector<16x32xf32>
    %cst_116 = arith.constant 1.06140542 : f32
    %282 = vector.broadcast %cst_116 : f32 to vector<16x32xf32>
    %283 = arith.mulf %282, %281 : vector<16x32xf32>
    %cst_117 = arith.constant 1.45315206 : f32
    %284 = vector.broadcast %cst_117 : f32 to vector<16x32xf32>
    %285 = arith.subf %283, %284 : vector<16x32xf32>
    %286 = arith.mulf %285, %281 : vector<16x32xf32>
    %cst_118 = arith.constant 1.42141378 : f32
    %287 = vector.broadcast %cst_118 : f32 to vector<16x32xf32>
    %288 = arith.addf %286, %287 : vector<16x32xf32>
    %289 = arith.mulf %288, %281 : vector<16x32xf32>
    %cst_119 = arith.constant 0.284496725 : f32
    %290 = vector.broadcast %cst_119 : f32 to vector<16x32xf32>
    %291 = arith.subf %289, %290 : vector<16x32xf32>
    %292 = arith.mulf %291, %281 : vector<16x32xf32>
    %cst_120 = arith.constant 0.254829586 : f32
    %293 = vector.broadcast %cst_120 : f32 to vector<16x32xf32>
    %294 = arith.addf %292, %293 : vector<16x32xf32>
    %295 = arith.mulf %294, %281 : vector<16x32xf32>
    %cst_121 = arith.constant 0.000000e+00 : f32
    %296 = vector.broadcast %cst_121 : f32 to vector<16x32xf32>
    %297 = arith.subf %296, %275 : vector<16x32xf32>
    %298 = arith.mulf %297, %275 : vector<16x32xf32>
    %299 = math.exp %298 : vector<16x32xf32>
    %300 = arith.mulf %295, %299 : vector<16x32xf32>
    %cst_122 = arith.constant 1.000000e+00 : f32
    %301 = vector.broadcast %cst_122 : f32 to vector<16x32xf32>
    %302 = arith.subf %301, %300 : vector<16x32xf32>
    %cst_123 = arith.constant 0.000000e+00 : f32
    %303 = vector.broadcast %cst_123 : f32 to vector<16x32xf32>
    %304 = arith.cmpf olt, %274, %303 : vector<16x32xf32>
    %cst_124 = arith.constant 0.000000e+00 : f32
    %305 = vector.broadcast %cst_124 : f32 to vector<16x32xf32>
    %306 = arith.subf %305, %302 : vector<16x32xf32>
    %307 = arith.select %304, %306, %302 : vector<16x32xi1>, vector<16x32xf32>
    %cst_125 = arith.constant 1.000000e+00 : f32
    %308 = vector.broadcast %cst_125 : f32 to vector<16x32xf32>
    %309 = arith.addf %308, %307 : vector<16x32xf32>
    %310 = arith.mulf %272, %309 : vector<16x32xf32>
    %c712 = arith.constant 712 : index
    %c0_126 = arith.constant 0 : index
    %311 = vector.load %arg0[%c712, %c0_126] : memref<1072x128xf32, #tpu.memory_space<vmem>>, vector<32x32xf32>
    %cst_127 = arith.constant dense<0.000000e+00> : vector<16x32xf32>
    %312 = tpu.matmul %310, %311, %cst_127 {dimension_numbers = #tpu.dot_dimension_numbers<[1], [0], [0], [1], [0, 0, 1, 1], [], []>} : vector<16x32xf32>, vector<32x32xf32>, vector<16x32xf32> -> vector<16x32xf32>
    %c744 = arith.constant 744 : index
    %c0_128 = arith.constant 0 : index
    %313 = vector.load %arg0[%c744, %c0_128] : memref<1072x128xf32, #tpu.memory_space<vmem>>, vector<1x32xf32>
    %314 = vector.broadcast %313 : vector<1x32xf32> to vector<16x32xf32>
    %315 = arith.addf %312, %314 : vector<16x32xf32>
    %c2 = arith.constant 2 : index
    %316 = memref.load %arg1[%c2] : memref<4xf32, #tpu.memory_space<smem>>
    %317 = vector.broadcast %316 : f32 to vector<16x32xf32>
    %318 = arith.mulf %317, %315 : vector<16x32xf32>
    %cst_129 = arith.constant 1.000000e+00 : f32
    %319 = arith.subf %cst_129, %316 : f32
    %320 = vector.broadcast %319 : f32 to vector<16x32xf32>
    %321 = arith.mulf %320, %139 : vector<16x32xf32>
    %322 = arith.addf %318, %321 : vector<16x32xf32>
    %c40 = arith.constant 40 : index
    %c0_130 = arith.constant 0 : index
    %323 = vector.load %arg0[%c40, %c0_130] : memref<1072x128xf32, #tpu.memory_space<vmem>>, vector<32x5xf32>
    %cst_131 = arith.constant dense<0.000000e+00> : vector<16x5xf32>
    %324 = tpu.matmul %322, %323, %cst_131 {dimension_numbers = #tpu.dot_dimension_numbers<[1], [0], [0], [1], [0, 0, 1, 1], [], []>} : vector<16x32xf32>, vector<32x5xf32>, vector<16x5xf32> -> vector<16x5xf32>
    %c72 = arith.constant 72 : index
    %c0_132 = arith.constant 0 : index
    %325 = vector.load %arg0[%c72, %c0_132] : memref<1072x128xf32, #tpu.memory_space<vmem>>, vector<1x5xf32>
    %326 = vector.broadcast %325 : vector<1x5xf32> to vector<16x5xf32>
    %327 = arith.addf %324, %326 : vector<16x5xf32>
    %cst_133 = arith.constant dense<0xFF800000> : vector<16xf32>
    %328 = vector.multi_reduction <maximumf>, %327, %cst_133 [1] : vector<16x5xf32> to vector<16xf32>
    %329 = vector.shape_cast %328 : vector<16xf32> to vector<16x1xf32>
    %330 = vector.broadcast %329 : vector<16x1xf32> to vector<16x5xf32>
    %331 = arith.subf %327, %330 : vector<16x5xf32>
    %332 = math.exp %331 : vector<16x5xf32>
    %cst_134 = arith.constant dense<0.000000e+00> : vector<16xf32>
    %333 = vector.multi_reduction <add>, %332, %cst_134 [1] : vector<16x5xf32> to vector<16xf32>
    %334 = vector.shape_cast %333 : vector<16xf32> to vector<16x1xf32>
    %335 = vector.broadcast %334 : vector<16x1xf32> to vector<16x5xf32>
    %336 = arith.divf %332, %335 : vector<16x5xf32>
    %c0_135 = arith.constant 0 : index
    %c0_136 = arith.constant 0 : index
    %337 = vector.load %arg4[%c0_135, %c0_136] : memref<16x5xf32, #tpu.memory_space<vmem>>, vector<16x5xf32>
    tpu.vector_store %arg4[%c0_135, %c0_136], %336 {strides = array<i32>} : memref<16x5xf32, #tpu.memory_space<vmem>>, vector<16x5xf32>,
    return
  }
}

</mosaic_0001>

<bundles_post_ra>
// kernel: tpu_custom_call.1
= control target key start
LH: loop header
LB: loop body
LE: loop exit
PB: predicated region body
PF: predicated region fallthrough
CT: control target
= control target key end

     0   :  { %9 = vsyncpa [#allocation3], 0  ;;  %s4369_s0 = inlined_call_operand.hbm [shape: f32[1072,128], index: 0, kind: input, shape index: {}]   ;;  %s4370_s1 = inlined_call_operand.vmem [shape: f32[4], index: 1, kind: input, shape index: {}]   ;;  %s4371_s2 = inlined_call_operand.hbm [shape: f32[16,12], index: 2, kind: input, shape index: {}]   ;;  %s4372_s3 = inlined_call_operand.vmem [shape: f32[8,6], index: 3, kind: input, shape index: {}]   ;;  %s4373_s4 = inlined_call_operand.vmem [shape: f32[16,5], index: 4, kind: output, shape index: {}]  }
   0x1   :  { %10 = vsyncpa [#allocation4], 0 }
   0x2   :  { %11 = vsyncpa [#allocation7], 0  ;;  %s3877_s15 = smov [#allocation2]   ;;  %s30_s19 = sshll.u32 %s4370_s1, 4  ;;  %s31_s19 = int_to_ptr.vmem [resolvable:$true] %s30_s19 }
   0x3   :  { %s17_s16 = sshll.u32 %s3877_s15, 4  ;;  %s3815_s22 = scalar_lea.hbm %s4369_s0, 17152  ;;  %s18_s16 = int_to_ptr.vmem [resolvable:$true] %s17_s16 }
   0x4   :  { %p3816_p0 = scmp.ne.s32.totalorder %s4369_s0, %s3815_s22  ;;  %p3819_p1 = scmp.lt.u32.totalorder %s3815_s22, %s4369_s0 }
   0x6   :  { %p3821_p2 = pnand %p3819_p1, %p3816_p0 }
   0x8   :  { %3824 = shalt.err (!%p3821_p2)
}
   0x9   :  { %s3825_s27 = scalar_lea.vmem %s18_s16, 17152  ;;  %p3830_p4 = scmp.lt.s32.totalorder %s18_s16, %s18_s16 }
   0xa   :  { %p3826_p3 = scmp.ne.s32.totalorder %s18_s16, %s3825_s27  ;;  %p3831_p5 = scmp.lt.s32.totalorder %s3825_s27, %s3825_s27 }
   0xc   :  { %p3832_p6 = por %p3831_p5, %p3830_p4 }
   0xe   :  { %p3833_p7 = pnand %p3832_p6, %p3826_p3 }
  0x10   :  { %3836 = shalt.err (!%p3833_p7)
}
  0x11   :  { %s3878_s1 = smov 128   ;;  %s3879_s28 = smov 8  }
  0x12   :  { %23 = dma.hbm_to_vmem [thread:$0]  %s4369_s0, 17152, %s18_s16, [#allocation3], %s3878_s1, %s3878_s1, %s3879_s28  }
  0x13   :  { %s3837_s5 = scalar_lea.vmem %s31_s19, 16  ;;  %p3842_p9 = scmp.lt.s32.totalorder %s31_s19, %s31_s19 }
  0x14   :  { %p3838_p8 = scmp.ne.s32.totalorder %s31_s19, %s3837_s5  ;;  %p3843_p10 = scmp.lt.s32.totalorder %s3837_s5, %s3837_s5 }
  0x16   :  { %p3844_p11 = por %p3843_p10, %p3842_p9 }
  0x18   :  { %p3845_p12 = pnand %p3844_p11, %p3838_p8 }
  0x1a   :  { %3848 = shalt.err (!%p3845_p12)
}
  0x1b   :  { %s3880_s6 = smov [#allocation5]   ;;  %s3881_s7 = smov [#allocation6]  }
  0x1c   :  { %33 = dma.vmem_to_smem %s31_s19, 16, %s3880_s6, [#allocation4]  }
  0x1d   :  { %s39_s8 = sshll.u32 %s3881_s7, 4  ;;  %s3849_s11 = scalar_lea.hbm %s4371_s2, 256  ;;  %s40_s8 = int_to_ptr.vmem [resolvable:$true] %s39_s8 }
  0x1e   :  { %p3850_p13 = scmp.ne.s32.totalorder %s4371_s2, %s3849_s11  ;;  %p3853_p0 = scmp.lt.u32.totalorder %s3849_s11, %s4371_s2 }
  0x20   :  { %p3855_p1 = pnand %p3853_p0, %p3850_p13 }
  0x22   :  { %3858 = shalt.err (!%p3855_p1)
}
  0x23   :  { %s3859_s15 = scalar_lea.vmem %s40_s8, 256  ;;  %p3864_p3 = scmp.lt.s32.totalorder %s40_s8, %s40_s8 }
  0x24   :  { %p3860_p2 = scmp.ne.s32.totalorder %s40_s8, %s3859_s15  ;;  %p3865_p4 = scmp.lt.s32.totalorder %s3859_s15, %s3859_s15 }
  0x26   :  { %p3866_p5 = por %p3865_p4, %p3864_p3 }
  0x28   :  { %p3867_p6 = pnand %p3866_p5, %p3860_p2 }
  0x2a   :  { %3870 = shalt.err (!%p3867_p6)
}
  0x2b   :  { %45 = dma.hbm_to_vmem [thread:$0]  %s4371_s2, 256, %s40_s8, [#allocation7], %s3878_s1, %s3878_s1, %s3879_s28  }
  0x2c   :  { %3871 = dma.done.wait [#allocation3], 17152  }
  0x2d   :  { %3872 = vsyncadd [#allocation3], 4294950144 }
  0x2e   :  { %3873 = dma.done.wait [#allocation4], 16  }
  0x2f   :  { %3874 = vsyncadd [#allocation4], 4294967280 }
  0x30   :  { %3875 = dma.done.wait [#allocation7], 256  }
  0x31   :  { %3876 = vsyncadd [#allocation7], 4294967040 }
  0x32   :  { %57 = sfence }
  0x33   :  { %v180_v0 = vld [vmem:[#allocation2 + $0x18] sm:$0x3f]  ;;  %vm190_vm0 = vcmask 1045504   ;;  %v85_v1 = vld [vmem:[#allocation2] sm:$0xff]  ;;  %v3882_v2 = vmov 0.0   ;;  %vm3883_vm1 = vmmov 0  }
  0x34   :  { %3245 = vmatprep.subr.mxu1 %v3882_v2  ;;  %3247 = vmatprep.mubr.msk.f32.mxu1 %vm3883_vm1, %v3882_v2  ;;  %v86_v3 = vld [vmem:[#allocation2 + $0x8] sm:$0xf]  ;;  %vm99_vm2 = vcmask 1043456   ;;  %v60_v4 = vld [vmem:[%s4372_s3] sm:$0xff]  ;;  %vm186_vm3 = vcmask 48128   ;;  %vm3884_vm4 = vmmov 1  }
  0x35   :  { %3246 = vmatpush3.msk.msra.mxu1 %vm190_vm0, %v180_v0  ;;  %v3529_v5 = vpack.c.bf16 %v86_v3, %v85_v1  ;;  %vm3530_vm5 = vmpackc.low %vm99_vm2, %vm3884_vm4  ;;  %v58_v6 = vld [vmem:[#allocation6] sm:$0xff]  ;;  %vm92_vm6 = vcmask 97280   ;;  %v356_v7 = vld [vmem:[#allocation2 + $0x160] sm:$0xff]  ;;  %v3885_v11 = vmov 0.0|0.0   ;;  %vm274_vm7 = vcmask 261120   ;;  %s1478_s3 = sld [smem:[#allocation5]] }
  0x36   :  { %3248 = vmatmul.mubr.msk.f32.vlgmr.msra.gmra.mrb[0].mxu1 %vm186_vm3, %v60_v4  ;;  %3242 = vmatprep.mubr.msk.f32.mxu0 %vm92_vm6, %v58_v6  ;;  %v357_v8 = vld [vmem:[#allocation2 + $0x168] sm:$0xff]  ;;  %v59_v9 = vld [vmem:[#allocation6 + $0x8] sm:$0xff]  ;;  %v358_v12 = vld [vmem:[#allocation2 + $0x170] sm:$0xff]  ;;  %vm1078_vm9 = vcmask 195584   ;;  %vm1595_vm10 = vcmask 130048   ;;  %s3036_s20 = sld [smem:[#allocation5 + $0x1]] }
  0x37   :  { %3531 = vmatprep.subr.msk.bf16.mxu0 %vm3530_vm5, %v3529_v5  ;;  %v3544_v10 = vpack.c.bf16 %v357_v8, %v356_v7  ;;  %v359_v13 = vld [vmem:[#allocation2 + $0x178] sm:$0xff]  ;;  %v265_v15 = vld [vmem:[#allocation2 + $0x110] sm:$0xff]  ;;  %v523_v19 = vld [vmem:[#allocation2 + $0x1e0] sm:$0xff]  ;;  %s3076_s22 = sld [smem:[#allocation5 + $0x2]] }
  0x38   :  { %3534 = vmatpush3.bf16.msk.msra.mxu0 %vm3530_vm5, %v3529_v5  ;;  %v3547_v14 = vpack.c.bf16 %v359_v13, %v358_v12  ;;  %v266_v16 = vld [vmem:[#allocation2 + $0x118] sm:$0xff]  ;;  %v267_v21 = vld [vmem:[#allocation2 + $0x120] sm:$0xff]  ;;  %v268_v22 = vld [vmem:[#allocation2 + $0x128] sm:$0xff] }
  0x39   :  { %3543 = vmatprep.subr.bf16.mxu0 %v3885_v11  ;;  %v3535_v17 = vpack.c.bf16 %v266_v16, %v265_v15  ;;  %v522_v18 = vld [vmem:[#allocation2 + $0x1d8] sm:$0xff]  ;;  %v3539_v23 = vpack.c.bf16 %v268_v22, %v267_v21  ;;  %v438_v24 = vld [vmem:[#allocation2 + $0x1b0] sm:$0xff]  ;;  %v2972_v27 = vld [vmem:[#allocation2 + $0x20] ss:$0 sm:$0xff] }
  0x3a   :  { %v3557_v20 = vpack.c.bf16 %v523_v19, %v522_v18  ;;  %v439_v25 = vld [vmem:[#allocation2 + $0x1b8] sm:$0xff]  ;;  %v524_v29 = vld [vmem:[#allocation2 + $0x1e8] sm:$0xff]  ;;  %v525_v30 = vld [vmem:[#allocation2 + $0x1f0] sm:$0xff] }
  0x3b   :  { %3243 = vmatmul.mubr.msk.f32.vlgmr.msra.gmra.mrb[0].mxu0 %vm92_vm6, %v59_v9  ;;  %3536 = vmatprep.subr.bf16.mxu1 %v3535_v17  ;;  %v3549_v26 = vpack.c.bf16 %v439_v25, %v438_v24  ;;  %v2968_v34 = vld [vmem:[#allocation2 + $0x10] ss:$0 sm:$0xff]  ;;  %v3561_v35 = vpack.c.bf16 %v525_v30, %v524_v29  ;;  %v440_v40 = vld [vmem:[#allocation2 + $0x1c0] sm:$0xff]  ;;  %v441_v41 = vld [vmem:[#allocation2 + $0x1c8] sm:$0xff]  ;;  %s1482_s19 = ssub.f32 1.0, %s1478_s3 }
  0x3c   :  { %3545 = vmatpush3.bf16.msra.mxu0 %v3544_v10  ;;  %3269 = vmatprep.mubr.msk.f32.mxu0 %vm3883_vm1, %v3882_v2  ;;  %v685_v42 = vld [vmem:[#allocation2 + $0x228] sm:$0xff]  ;;  %v686_v43 = vld [vmem:[#allocation2 + $0x230] sm:$0xff]  ;;  %v3553_v46 = vpack.c.bf16 %v441_v41, %v440_v40  ;;  %v687_v48 = vld [vmem:[#allocation2 + $0x238] sm:$0xff]  ;;  %s1868_s21 = ssub.f32 1.0, %s3036_s20 }
  0x3d   :  { %3546 = vmatprep.subr.bf16.mxu0 %v3885_v11  ;;  %3538 = vmatpush3.bf16.msra.mxu1 %v3535_v17  ;;  %v3572_v47 = vpack.c.bf16 %v686_v43, %v685_v42  ;;  %v688_v49 = vld [vmem:[#allocation2 + $0x240] sm:$0xff]  ;;  %v848_v50 = vld [vmem:[#allocation2 + $0x278] sm:$0xff]  ;;  %v607_v53 = vld [vmem:[#allocation2 + $0x208] sm:$0xff]  ;;  %s2840_s23 = ssub.f32 1.0, %s3076_s22 }
  0x3e   :  { %3540 = vmatprep.subr.bf16.mxu1 %v3539_v23  ;;  %v849_v51 = vld [vmem:[#allocation2 + $0x280] sm:$0xff]  ;;  %v3575_v54 = vpack.c.bf16 %v688_v49, %v687_v48  ;;  %v850_v57 = vld [vmem:[#allocation2 + $0x288] sm:$0xff]  ;;  %v851_v58 = vld [vmem:[#allocation2 + $0x290] sm:$0xff] }
  0x3f   :  { %v606_v52 = vld [vmem:[#allocation2 + $0x200] sm:$0xff]  ;;  %v3585_v55 = vpack.c.bf16 %v849_v51, %v848_v50  ;;  %v608_v59 = vld [vmem:[#allocation2 + $0x210] sm:$0xff]  ;;  %v609_v60 = vld [vmem:[#allocation2 + $0x218] sm:$0xff]  ;;  %v3589_v63 = vpack.c.bf16 %v851_v58, %v850_v57 }
  0x40   :  { %3548 = vmatpush3.bf16.msra.mxu0 %v3547_v14  ;;  %v3566_v56 = vpack.c.bf16 %v607_v53, %v606_v52  ;;  %v764_v61 = vld [vmem:[#allocation2 + $0x250] sm:$0xff]  ;;  %v765_v62 = vld [vmem:[#allocation2 + $0x258] sm:$0xff]  ;;  %v3569_v0 = vpack.c.bf16 %v609_v60, %v608_v59  ;;  %v766_v3 = vld [vmem:[#allocation2 + $0x260] sm:$0xff] }
  0x41   :  { %3558 = vmatprep.subr.bf16.mxu0 %v3557_v20  ;;  %3542 = vmatpush3.bf16.msra.mxu1 %v3539_v23  ;;  %v3577_v1 = vpack.c.bf16 %v765_v62, %v764_v61  ;;  %v767_v4 = vld [vmem:[#allocation2 + $0x268] sm:$0xff]  ;;  %v2975_v8 = vld [vmem:[#allocation2 + $0x130] ss:$0 sm:$0xff]  ;;  %v2983_v10 = vld [vmem:[#allocation2 + $0x1f8] ss:$0 sm:$0xff] }
  0x42   :  { %3550 = vmatprep.subr.bf16.mxu1 %v3549_v26  ;;  %v3581_v5 = vpack.c.bf16 %v767_v4, %v766_v3  ;;  %v3996_v13 = vld [vmem:[#allocation2 + $0x90] sm:$0xff]  ;;  %v2988_v30 = vld [vmem:[#allocation2 + $0x248] ss:$0 sm:$0xff]  ;;  %vm4007_vm8 = vmpackc.low %vm274_vm7, %vm274_vm7 }
  0x43   :  { %v2980_v21 = vld [vmem:[#allocation2 + $0x1d0] ss:$0 sm:$0xff]  ;;  %v4016_v52 = vld [vmem:[#allocation2 + $0x98] sm:$0xff]  ;;  %v4018_v53 = vld [vmem:[#allocation2 + $0xa0] sm:$0xff] }
  0x44   :  { %v2990_v40 = vld [vmem:[#allocation2 + $0x270] ss:$0 sm:$0xff]  ;;  %v4037_v60 = vld [vmem:[#allocation2 + $0xb8] sm:$0xff]  ;;  %v2978_v61 = vld [vmem:[#allocation2 + $0x180] ss:$0 sm:$0xff] }
  0x45   :  { %v4029_v57 = vld [vmem:[#allocation2 + $0xb0] sm:$0xff]  ;;  %v4040_v62 = vld [vmem:[#allocation2 + $0xc0] sm:$0xff]  ;;  %v4047_v3 = vld [vmem:[#allocation2 + $0xc8] sm:$0xff] }
  0x46   :  { %v4050_v4 = vld [vmem:[#allocation2 + $0xf0] sm:$0xff]  ;;  %v4277_v48 = vld [vmem:[#allocation2 + $0xa8] sm:$0xff] }
 0x109   :  { %v260_v28 = vpop.f32.mrb[0].mxu1 }
 0x10a   :  { %v261_v31 = vadd.f32 %v2972_v27, %v260_v28  ;;  %v3249_v32 = vpop.f32.mrb[1].mxu1 }
 0x10b   :  { %v2993_v32 = vld [vmem:[#allocation2 + $0x298] ss:$0 sm:$0xff] }
 0x10c   :  { %v3954_v33 = vmax.f32 %v261_v31, 0.0 }
 0x10e   :  { %v3244_v36 = vpop.f32.mrb[0].mxu0  ;;  %3270 = vmatmul.mubr.msk.f32.vlgmr.msra.gmra.mrb[2].mxu0 %vm274_vm7, %v3954_v33 }
 0x10f   :  { %v175_v37 = vadd.f32 %v3244_v36, %v2968_v34  ;;  %v169_v38 = vpop.f32.mrb[1].mxu0  ;;  %3560 = vmatpush3.bf16.msra.mxu0 %v3557_v20 }
 0x110   :  { %v170_v39 = vadd.f32 %v2968_v34, %v169_v38  ;;  %3562 = vmatprep.subr.bf16.mxu0 %v3561_v35 }
 0x111   :  { %v3960_v45 = vmax.f32 %v175_v37, 0.0 }
 0x112   :  { %v3958_v44 = vmax.f32 %v170_v39, 0.0  ;;  %v2986_v39 = vld [vmem:[#allocation2 + $0x220] ss:$0 sm:$0xff] }
 0x113   :  { %3564 = vmatpush3.bf16.msra.mxu0 %v3561_v35 }
 0x114   :  { %3258 = vmatprep.mubr.msk.f32.mxu1 %vm274_vm7, %v3958_v44  ;;  %3291 = vmatprep.mubr.msk.f32.mxu0 %vm274_vm7, %v3958_v44 }
 0x115   :  { %3259 = vmatmul.mubr.msk.f32.vlgmr.msra.gmra.mrb[2].mxu1 %vm274_vm7, %v3960_v45  ;;  %3571 = vmatprep.subr.bf16.mxu0 %v3885_v11 }
 0x116   :  { %3552 = vmatpush3.bf16.msra.mxu1 %v3549_v26  ;;  %3280 = vmatprep.mubr.msk.f32.mxu1 %vm274_vm7, %v3958_v44 }
 0x117   :  { %3292 = vmatmul.mubr.msk.f32.vlgmr.msra.gmra.mrb[4].mxu0 %vm274_vm7, %v3960_v45  ;;  %3554 = vmatprep.subr.bf16.mxu1 %v3553_v46 }
 0x118   :  { %3573 = vmatpush3.bf16.msra.mxu0 %v3572_v47  ;;  %3313 = vmatprep.mubr.msk.f32.mxu0 %vm3883_vm1, %v3882_v2 }
 0x119   :  { %3574 = vmatprep.subr.bf16.mxu0 %v3885_v11 }
 0x11a   :  { %3556 = vmatpush3.bf16.msra.mxu1 %v3553_v46 }
 0x11b   :  { %3565 = vmatprep.subr.bf16.mxu1 %v3885_v11 }
 0x11c   :  { %3576 = vmatpush3.bf16.msra.mxu0 %v3575_v54 }
 0x11d   :  { %3281 = vmatmul.mubr.msk.f32.vlgmr.msra.gmra.mrb[4].mxu1 %vm274_vm7, %v3960_v45  ;;  %3586 = vmatprep.subr.bf16.mxu0 %v3585_v55 }
 0x11e   :  { %3567 = vmatpush3.bf16.msra.mxu1 %v3566_v56  ;;  %3302 = vmatprep.mubr.msk.f32.mxu1 %vm3883_vm1, %v3882_v2  ;;  %v4026_v56 = vld [vmem:[#allocation2 + $0xa8] sm:$0xff] }
 0x11f   :  { %3314 = vmatmul.mubr.msk.f32.vlgmr.msra.gmra.mrb[6].mxu0 %vm274_vm7, %v3954_v33  ;;  %3568 = vmatprep.subr.bf16.mxu1 %v3885_v11 }
 0x120   :  { %3588 = vmatpush3.bf16.msra.mxu0 %v3585_v55  ;;  %3335 = vmatprep.mubr.msk.f32.mxu0 %vm274_vm7, %v3958_v44 }
 0x121   :  { %3590 = vmatprep.subr.bf16.mxu0 %v3589_v63 }
 0x122   :  { %3570 = vmatpush3.bf16.msra.mxu1 %v3569_v0 }
 0x123   :  { %3578 = vmatprep.subr.bf16.mxu1 %v3577_v1 }
 0x124   :  { %3592 = vmatpush3.bf16.msra.mxu0 %v3589_v63 }
 0x125   :  { %3303 = vmatmul.mubr.msk.f32.vlgmr.msra.gmra.mrb[6].mxu1 %vm274_vm7, %v3954_v33 }
 0x126   :  { %3580 = vmatpush3.bf16.msra.mxu1 %v3577_v1  ;;  %3324 = vmatprep.mubr.msk.f32.mxu1 %vm274_vm7, %v3958_v44 }
 0x127   :  { %3336 = vmatmul.mubr.msk.f32.vlgmr.msra.gmra.mrb[8].mxu0 %vm274_vm7, %v3960_v45  ;;  %3582 = vmatprep.subr.bf16.mxu1 %v3581_v5 }
 0x12a   :  { %3584 = vmatpush3.bf16.msra.mxu1 %v3581_v5 }
 0x12d   :  { %3325 = vmatmul.mubr.msk.f32.vlgmr.msra.gmra.mrb[8].mxu1 %vm274_vm7, %v3960_v45 }
 0x1e1   :  { %v3994_v6 = vpop.f32.mrb[2].mxu0 }
 0x1e2   :  { %v3271_v7 = vpop.f32.mrb[3].mxu0  ;;  %v435_v0 = vadd.f32 %v2978_v61, %v3994_v6  ;;  %v4058_v6 = vld [vmem:[#allocation2 + $0x100] sm:$0xff] }
 0x1e3   :  { %v4054_v7 = vld [vmem:[#allocation2 + $0xf8] sm:$0xff] }
 0x1e8   :  { %v3260_v9 = vpop.f32.mrb[2].mxu1 }
 0x1e9   :  { %v347_v12 = vpop.f32.mrb[3].mxu1  ;;  %v353_v51 = vadd.f32 %v3260_v9, %v2975_v8  ;;  %v1489_v9 = vmul.f32 %v435_v0, %v4054_v7 }
 0x1ea   :  { %v3998_v14 = vadd.f32 %v2975_v8, %v347_v12  ;;  %v3293_v15 = vpop.f32.mrb[4].mxu0  ;;  %v1488_v8 = vmul.f32 %v435_v0, %v4050_v4  ;;  %v4063_v12 = vld [vmem:[#allocation2 + $0x108] sm:$0xff] }
 0x1eb   :  { %v603_v16 = vadd.f32 %v3293_v15, %v2983_v10  ;;  %v597_v17 = vpop.f32.mrb[5].mxu0  ;;  %v933_v54 = vmul.f32 %v353_v51, %v4016_v52  ;;  %v935_v58 = vmul.f32 %v353_v51, %v4026_v56  ;;  %v937_v63 = vmul.f32 %v353_v51, %v4037_v60 }
 0x1ec   :  { %v598_v18 = vadd.f32 %v2983_v10, %v597_v17  ;;  %v932_v19 = vmul.f32 %v3998_v14, %v3996_v13  ;;  %v934_v55 = vmul.f32 %v3998_v14, %v4018_v53  ;;  %v936_v59 = vmul.f32 %v3998_v14, %v4029_v57 }
 0x1ed   :  { %v938_v1 = vmul.f32 %v3998_v14, %v4040_v62  ;;  %v939_v5 = vmul.f32 %v353_v51, %v4047_v3  ;;  %v1490_v10 = vmul.f32 %v435_v0, %v4058_v6  ;;  %v1491_v14 = vmul.f32 %v435_v0, %v4063_v12 }
 0x1ee   :  { %v4002_v20 = vpack.c.bf16 %v603_v16, %v598_v18  ;;  %3344 = vmatprep.mubr.msk.f32.mxu1 %vm274_vm7, %v932_v19 }
 0x1f0   :  { %v3282_v22 = vpop.f32.mrb[4].mxu1 }
 0x1f1   :  { %v519_v23 = vadd.f32 %v3282_v22, %v2980_v21  ;;  %v513_v24 = vpop.f32.mrb[5].mxu1 }
 0x1f2   :  { %v514_v25 = vadd.f32 %v2980_v21, %v513_v24  ;;  %v760_v26 = vpop.f32.mrb[6].mxu0 }
 0x1f3   :  { %v3315_v27 = vpop.f32.mrb[7].mxu0  ;;  %v761_v36 = vadd.f32 %v2988_v30, %v760_v26 }
 0x1f4   :  { %v3611_v28 = vpack.c.bf16 %v519_v23, %v514_v25 }
 0x1f8   :  { %v681_v29 = vpop.f32.mrb[6].mxu1 }
 0x1f9   :  { %v3304_v31 = vpop.f32.mrb[7].mxu1  ;;  %v682_v46 = vadd.f32 %v2986_v39, %v681_v29 }
 0x1fa   :  { %v3337_v34 = vpop.f32.mrb[8].mxu0 }
 0x1fb   :  { %v923_v35 = vpop.f32.mrb[9].mxu0  ;;  %v929_v41 = vadd.f32 %v3337_v34, %v2993_v32 }
 0x1fc   :  { %v924_v37 = vadd.f32 %v2993_v32, %v923_v35 }
 0x1fe   :  { %v3599_v38 = vpack.c.bf16 %v924_v37, %v761_v36 }
 0x200   :  { %v3326_v42 = vpop.f32.mrb[8].mxu1  ;;  %3600 = vmatprep.subr.bf16.mxu0 %v3599_v38 }
 0x201   :  { %v839_v43 = vpop.f32.mrb[9].mxu1  ;;  %3602 = vmatpush3.bf16.msra.mxu0 %v3599_v38  ;;  %v845_v50 = vadd.f32 %v3326_v42, %v2990_v40 }
 0x202   :  { %v840_v47 = vadd.f32 %v2990_v40, %v839_v43  ;;  %3360 = vmatprep.subr.mxu0 %v929_v41 }
 0x204   :  { %v3593_v49 = vpack.c.bf16 %v840_v47, %v682_v46 }
 0x205   :  { %3361 = vmatpush3.msra.mxu0 %v929_v41 }
 0x206   :  { %3595 = vmatprep.subr.msk.bf16.mxu1 %vm4007_vm8, %v3593_v49 }
 0x207   :  { %3598 = vmatpush3.bf16.xpose.msk.msra.mxu1 %vm4007_vm8, %v3593_v49 }
 0x208   :  { %3342 = vmatprep.subr.msk.mxu1 %vm274_vm7, %v845_v50 }
 0x20f   :  { %3343 = vmatpush3.xpose.msk.msra.mxu1 %vm274_vm7, %v845_v50 }
 0x210   :  { %3613 = vmatprep.subr.msk.bf16.mxu1 %vm4007_vm8, %v3611_v28 }
 0x212   :  { %3345 = vmatmul.mubr.msk.f32.vlgmr.msra.gmra.mrb[10].mxu1 %vm274_vm7, %v933_v54 }
 0x213   :  { %3347 = vmatprep.mubr.msk.f32.mxu1 %vm274_vm7, %v934_v55  ;;  %3616 = vmatpush3.bf16.xpose.msk.msra.mxu1 %vm4007_vm8, %v3611_v28 }
 0x216   :  { %3348 = vmatmul.mubr.msk.f32.gmra.mrb[12].mxu1 %vm274_vm7, %v935_v58 }
 0x217   :  { %3350 = vmatprep.mubr.msk.f32.mxu1 %vm274_vm7, %v936_v59 }
 0x21a   :  { %3351 = vmatmul.mubr.msk.f32.gmra.mrb[14].mxu1 %vm274_vm7, %v937_v63 }
 0x21b   :  { %3353 = vmatprep.mubr.msk.f32.mxu1 %vm274_vm7, %v938_v1  ;;  %v61_v1 = vld [vmem:[#allocation2 + $0x50] sm:$0xff] }
 0x21e   :  { %3354 = vmatmul.mubr.msk.f32.gmra.mrb[16].mxu1 %vm274_vm7, %v939_v5 }
 0x21f   :  { %3389 = vmatprep.mubr.msk.f32.mxu1 %vm274_vm7, %v1488_v8 }
 0x222   :  { %3390 = vmatmul.mubr.msk.f32.vlgmr.msra.gmra.mrb[18].mxu1 %vm274_vm7, %v1489_v9 }
 0x223   :  { %3392 = vmatprep.mubr.msk.f32.mxu1 %vm274_vm7, %v1490_v10 }
 0x226   :  { %3393 = vmatmul.mubr.msk.f32.gmra.mrb[20].mxu1 %vm274_vm7, %v1491_v14 }
 0x2e5   :  { %v3346_v15 = vpop.f32.mrb[10].mxu1 }
 0x2e6   :  { %v1039_v16 = vpop.f32.mrb[11].mxu1  ;;  %v1082_v21 = vsel %vm1078_vm9, %v3346_v15, -inf }
 0x2e7   :  { %v1079_v17 = vsel %vm1078_vm9, %v1039_v16, -inf }
 0x2e8   :  { %1080 = vmax.xlane.f32.xlu0 %v1079_v17 }
 0x2e9   :  { %v3349_v18 = vpop.f32.mrb[12].mxu1 }
 0x2ea   :  { %v1049_v19 = vpop.f32.mrb[13].mxu1  ;;  %v1088_v25 = vsel %vm1078_vm9, %v3349_v18, -inf }
 0x2eb   :  { %v1085_v22 = vsel %vm1078_vm9, %v1049_v19, -inf }
 0x2ec   :  { %1083 = vmax.xlane.f32.xlu0 %v1082_v21  ;;  %1086 = vmax.xlane.f32.xlu1 %v1085_v22 }
 0x2ed   :  { %v3352_v23 = vpop.f32.mrb[14].mxu1 }
 0x2ee   :  { %v1059_v24 = vpop.f32.mrb[15].mxu1  ;;  %v1094_v29 = vsel %vm1078_vm9, %v3352_v23, -inf }
 0x2ef   :  { %v1091_v26 = vsel %vm1078_vm9, %v1059_v24, -inf }
 0x2f0   :  { %1089 = vmax.xlane.f32.xlu1 %v1088_v25  ;;  %1092 = vmax.xlane.f32.xlu0 %v1091_v26  ;;  %v4099_v25 = vld [vmem:[#allocation2 + $0x68] sm:$0xff] }
 0x2f1   :  { %v3355_v27 = vpop.f32.mrb[16].mxu1 }
 0x2f2   :  { %v1069_v28 = vpop.f32.mrb[17].mxu1  ;;  %v1100_v34 = vsel %vm1078_vm9, %v3355_v27, -inf }
 0x2f3   :  { %v1097_v30 = vsel %vm1078_vm9, %v1069_v28, -inf }
 0x2f4   :  { %1095 = vmax.xlane.f32.xlu1 %v1094_v29  ;;  %1098 = vmax.xlane.f32.xlu0 %v1097_v30 }
 0x2f5   :  { %v4076_v31 = vpop.f32.mrb[18].mxu1 }
 0x2f6   :  { %v4078_v32 = vpop.f32.mrb[19].mxu1 }
 0x2f8   :  { %1101 = vmax.xlane.f32.xlu1 %v1100_v34 }
 0x2f9   :  { %v4081_v35 = vpop.f32.mrb[20].mxu1 }
 0x2fa   :  { %v4083_v36 = vpop.f32.mrb[21].mxu1 }
 0x375   :  { %v1081_v37 = vpop.xlane.xlu0 %1080 }
 0x376   :  { %v1103_v38 = vsub.f32 %v1039_v16, %v1081_v37  ;;  %v4087_v16 = vld [vmem:[#allocation2 + $0x58] sm:$0xff] }
 0x378   :  { %v1111_v39 = vmul.f32 1.442695, %v1103_v38  ;;  %v4113_v38 = vld [vmem:[#allocation2 + $0x78] sm:$0xff] }
 0x379   :  { %v1084_v40 = vpop.xlane.xlu0 %1083  ;;  %v1087_v41 = vpop.xlane.xlu1 %1086 }
 0x37a   :  { %3698 = vpow2.f32 %v1111_v39  ;;  %v1104_v42 = vsub.f32 %v3346_v15, %v1084_v40  ;;  %v1105_v43 = vsub.f32 %v1049_v19, %v1087_v41  ;;  %v4117_v40 = vld [vmem:[#allocation2 + $0x80] sm:$0xff] }
 0x37c   :  { %v1113_v46 = vmul.f32 1.442695, %v1104_v42  ;;  %v1115_v47 = vmul.f32 1.442695, %v1105_v43 }
 0x37d   :  { %v1090_v49 = vpop.xlane.xlu1 %1089  ;;  %v1093_v50 = vpop.xlane.xlu0 %1092 }
 0x37e   :  { %3700 = vpow2.f32 %v1113_v46  ;;  %v1106_v51 = vsub.f32 %v3349_v18, %v1090_v49  ;;  %v1107_v54 = vsub.f32 %v1059_v24, %v1093_v50  ;;  %v4091_v18 = vld [vmem:[#allocation2 + $0x60] sm:$0xff]  ;;  %v4127_v49 = vld [vmem:[#allocation2 + $0x88] sm:$0xff] }
 0x37f   :  { %3702 = vpow2.f32 %v1115_v47 }
 0x380   :  { %v1117_v55 = vmul.f32 1.442695, %v1106_v51  ;;  %v1119_v58 = vmul.f32 1.442695, %v1107_v54 }
 0x381   :  { %v1096_v59 = vpop.xlane.xlu1 %1095  ;;  %v1099_v61 = vpop.xlane.xlu0 %1098 }
 0x382   :  { %3704 = vpow2.f32 %v1117_v55  ;;  %v1108_v63 = vsub.f32 %v3352_v23, %v1096_v59  ;;  %v1109_v0 = vsub.f32 %v1069_v28, %v1099_v61  ;;  %v1596_v59 = vsel %vm1595_vm10, %v4078_v32, -inf }
 0x383   :  { %3706 = vpow2.f32 %v1119_v58  ;;  %v1599_v61 = vsel %vm1595_vm10, %v4076_v31, -inf }
 0x384   :  { %v3699_v5 = vpop.eup %3698  ;;  %v1121_v8 = vmul.f32 1.442695, %v1108_v63  ;;  %v1123_v9 = vmul.f32 1.442695, %v1109_v0  ;;  %v1602_v63 = vsel %vm1595_vm10, %v4083_v36, -inf  ;;  %v1605_v0 = vsel %vm1595_vm10, %v4081_v35, -inf }
 0x385   :  { %v1102_v10 = vpop.xlane.xlu1 %1101  ;;  %v4085_v14 = vmul.f32 %v3699_v5, %v61_v1  ;;  %v1388_v1 = vld [vmem:[#allocation2 + $0x138] sm:$0xff]  ;;  %v1389_v5 = vld [vmem:[#allocation2 + $0x140] sm:$0xff] }
 0x386   :  { %3708 = vpow2.f32 %v1121_v8  ;;  %v1110_v15 = vsub.f32 %v3355_v27, %v1102_v10  ;;  %v4103_v27 = vld [vmem:[#allocation2 + $0x70] sm:$0xff]  ;;  %v3603_v8 = vpack.c.bf16 %v1389_v5, %v1388_v1 }
 0x387   :  { %3710 = vpow2.f32 %v1123_v9  ;;  %v1135_v17 = vsel %vm1078_vm9, %v4085_v14, 0.0 }
 0x388   :  { %v3701_v19 = vpop.eup %3700  ;;  %v1125_v21 = vmul.f32 1.442695, %v1110_v15  ;;  %1136 = vadd.xlane.f32.xlu0 %v1135_v17  ;;  %3604 = vmatprep.subr.bf16.mxu0 %v3603_v8 }
 0x389   :  { %v3703_v22 = vpop.eup %3702  ;;  %v4094_v23 = vmul.f32 %v3701_v19, %v4087_v16 }
 0x38a   :  { %3712 = vpow2.f32 %v1125_v21  ;;  %v4097_v24 = vmul.f32 %v3703_v22, %v4091_v18 }
 0x38b   :  { %v1138_v26 = vsel %vm1078_vm9, %v4094_v23, 0.0 }
 0x38c   :  { %v3705_v28 = vpop.eup %3704  ;;  %1139 = vadd.xlane.f32.xlu1 %v1138_v26  ;;  %v1141_v29 = vsel %vm1078_vm9, %v4097_v24, 0.0 }
 0x38d   :  { %v3707_v30 = vpop.eup %3706  ;;  %1142 = vadd.xlane.f32.xlu0 %v1141_v29  ;;  %v4108_v34 = vmul.f32 %v3705_v28, %v4099_v25 }
 0x38e   :  { %v4111_v37 = vmul.f32 %v3707_v30, %v4103_v27 }
 0x38f   :  { %v1144_v39 = vsel %vm1078_vm9, %v4108_v34, 0.0 }
 0x390   :  { %v3709_v41 = vpop.eup %3708  ;;  %1145 = vadd.xlane.f32.xlu1 %v1144_v39  ;;  %v1147_v42 = vsel %vm1078_vm9, %v4111_v37, 0.0 }
 0x391   :  { %v3711_v43 = vpop.eup %3710  ;;  %1148 = vadd.xlane.f32.xlu0 %v1147_v42  ;;  %v4122_v46 = vmul.f32 %v3709_v41, %v4113_v38 }
 0x392   :  { %v4125_v47 = vmul.f32 %v3711_v43, %v4117_v40 }
 0x393   :  { %v1150_v50 = vsel %vm1078_vm9, %v4122_v46, 0.0 }
 0x394   :  { %v3713_v51 = vpop.eup %3712  ;;  %1151 = vadd.xlane.f32.xlu1 %v1150_v50  ;;  %v1153_v54 = vsel %vm1078_vm9, %v4125_v47, 0.0 }
 0x395   :  { %1154 = vadd.xlane.f32.xlu0 %v1153_v54  ;;  %v4134_v55 = vmul.f32 %v3713_v51, %v4127_v49  ;;  %v1390_v51 = vld [vmem:[#allocation2 + $0x148] sm:$0xff]  ;;  %v1391_v54 = vld [vmem:[#allocation2 + $0x150] sm:$0xff] }
 0x397   :  { %v1156_v58 = vsel %vm1078_vm9, %v4134_v55, 0.0 }
 0x398   :  { %1157 = vadd.xlane.f32.xlu1 %v1156_v58 }
 0x399   :  { %1597 = vmax.xlane.f32.xlu0 %v1596_v59 }
 0x39c   :  { %1600 = vmax.xlane.f32.xlu1 %v1599_v61 }
 0x39d   :  { %1603 = vmax.xlane.f32.xlu0 %v1602_v63 }
 0x3a0   :  { %1606 = vmax.xlane.f32.xlu1 %v1605_v0 }
 0x415   :  { %v1137_v9 = vpop.xlane.xlu0 %1136 }
 0x416   :  { %vm1159_vm11 = vcmp.gt.f32.partialorder %v1137_v9, 0.0 }
 0x417   :  { %v1167_v10 = vsel %vm1159_vm11, %v1137_v9, 1.0  ;;  %v3607_v9 = vpack.c.bf16 %v1391_v54, %v1390_v51  ;;  %v71_v51 = vld [vmem:[#allocation2 + $0xe0] sm:$0xff] }
 0x418   :  { %3714 = vrcp.f32 %v1167_v10 }
 0x419   :  { %v1140_v15 = vpop.xlane.xlu1 %1139 }
 0x41a   :  { %vm1160_vm12 = vcmp.gt.f32.partialorder %v1140_v15, 0.0  ;;  %v1143_v17 = vpop.xlane.xlu0 %1142 }
 0x41b   :  { %v1168_v19 = vsel %vm1160_vm12, %v1140_v15, 1.0  ;;  %vm1161_vm13 = vcmp.gt.f32.partialorder %v1143_v17, 0.0 }
 0x41c   :  { %3716 = vrcp.f32 %v1168_v19  ;;  %v1169_v21 = vsel %vm1161_vm13, %v1143_v17, 1.0 }
 0x41d   :  { %3718 = vrcp.f32 %v1169_v21  ;;  %v1146_v22 = vpop.xlane.xlu1 %1145 }
 0x41e   :  { %vm1162_vm14 = vcmp.gt.f32.partialorder %v1146_v22, 0.0  ;;  %v1149_v26 = vpop.xlane.xlu0 %1148 }
 0x41f   :  { %v1170_v28 = vsel %vm1162_vm14, %v1146_v22, 1.0  ;;  %vm1163_vm15 = vcmp.gt.f32.partialorder %v1149_v26, 0.0 }
 0x420   :  { %3720 = vrcp.f32 %v1170_v28  ;;  %v1171_v29 = vsel %vm1163_vm15, %v1149_v26, 1.0 }
 0x421   :  { %3722 = vrcp.f32 %v1171_v29  ;;  %v1152_v30 = vpop.xlane.xlu1 %1151 }
 0x422   :  { %v3715_v39 = vpop.eup %3714  ;;  %vm1164_vm0 = vcmp.gt.f32.partialorder %v1152_v30, 0.0  ;;  %v1155_v41 = vpop.xlane.xlu0 %1154 }
 0x423   :  { %v1172_v42 = vsel %vm1164_vm0, %v1152_v30, 1.0  ;;  %vm1165_vm2 = vcmp.gt.f32.partialorder %v1155_v41, 0.0  ;;  %v1176_v43 = vmul.f32 %v3715_v39, %v4085_v14 }
 0x424   :  { %3724 = vrcp.f32 %v1172_v42  ;;  %v1173_v50 = vsel %vm1165_vm2, %v1155_v41, 1.0  ;;  %v69_v41 = vld [vmem:[#allocation2 + $0xd0] sm:$0xff] }
 0x425   :  { %3726 = vrcp.f32 %v1173_v50  ;;  %v1158_v58 = vpop.xlane.xlu1 %1157  ;;  %3362 = vmatprep.mubr.msk.f32.mxu0 %vm1078_vm9, %v1176_v43  ;;  %v70_v50 = vld [vmem:[#allocation2 + $0xd8] sm:$0xff] }
 0x426   :  { %v3717_v59 = vpop.eup %3716  ;;  %vm1166_vm3 = vcmp.gt.f32.partialorder %v1158_v58, 0.0  ;;  %v1598_v61 = vpop.xlane.xlu0 %1597 }
 0x427   :  { %v3719_v63 = vpop.eup %3718  ;;  %v1174_v0 = vsel %vm1166_vm3, %v1158_v58, 1.0  ;;  %v1608_v1 = vsub.f32 %v4078_v32, %v1598_v61  ;;  %v1178_v5 = vmul.f32 %v3717_v59, %v4094_v23  ;;  %v72_v61 = vld [vmem:[#allocation2 + $0xe8] sm:$0xff] }
 0x428   :  { %3728 = vrcp.f32 %v1174_v0  ;;  %v1180_v14 = vmul.f32 %v3719_v63, %v4097_v24 }
 0x429   :  { %v1612_v10 = vmul.f32 1.442695, %v1608_v1  ;;  %v1601_v15 = vpop.xlane.xlu1 %1600  ;;  %3363 = vmatmul.mubr.msk.f32.vlgmr.msra.gmra.mrb[10].mxu0 %vm1078_vm9, %v1178_v5 }
 0x42a   :  { %v3721_v17 = vpop.eup %3720  ;;  %v1609_v19 = vsub.f32 %v4076_v31, %v1601_v15  ;;  %3606 = vmatpush3.bf16.msra.mxu0 %v3603_v8  ;;  %v1604_v21 = vpop.xlane.xlu0 %1603  ;;  %3365 = vmatprep.mubr.msk.f32.mxu0 %vm1078_vm9, %v1180_v14 }
 0x42b   :  { %v3723_v22 = vpop.eup %3722  ;;  %3730 = vpow2.f32 %v1612_v10  ;;  %v1610_v32 = vsub.f32 %v4083_v36, %v1604_v21  ;;  %3608 = vmatprep.subr.bf16.mxu0 %v3607_v9  ;;  %v1182_v23 = vmul.f32 %v3721_v17, %v4108_v34 }
 0x42c   :  { %v1614_v26 = vmul.f32 1.442695, %v1609_v19  ;;  %v1184_v24 = vmul.f32 %v3723_v22, %v4111_v37 }
 0x42d   :  { %v1616_v28 = vmul.f32 1.442695, %v1610_v32  ;;  %v1607_v29 = vpop.xlane.xlu1 %1606  ;;  %3366 = vmatmul.mubr.msk.f32.gmra.mrb[12].mxu0 %vm1078_vm9, %v1182_v23 }
 0x42e   :  { %v3725_v30 = vpop.eup %3724  ;;  %3732 = vpow2.f32 %v1614_v26  ;;  %v1611_v31 = vsub.f32 %v4081_v35, %v1607_v29  ;;  %3610 = vmatpush3.bf16.msra.mxu0 %v3607_v9  ;;  %3368 = vmatprep.mubr.msk.f32.mxu0 %vm1078_vm9, %v1184_v24 }
 0x42f   :  { %v3727_v8 = vpop.eup %3726  ;;  %3734 = vpow2.f32 %v1616_v28  ;;  %3618 = vmatprep.subr.bf16.mxu0 %v4002_v20  ;;  %v1186_v36 = vmul.f32 %v3725_v30, %v4122_v46 }
 0x430   :  { %v1618_v34 = vmul.f32 1.442695, %v1611_v31  ;;  %v1188_v37 = vmul.f32 %v3727_v8, %v4125_v47 }
 0x431   :  { %3369 = vmatmul.mubr.msk.f32.gmra.mrb[14].mxu0 %vm1078_vm9, %v1186_v36 }
 0x432   :  { %v3729_v39 = vpop.eup %3728  ;;  %3736 = vpow2.f32 %v1618_v34  ;;  %3371 = vmatprep.mubr.msk.f32.mxu0 %vm1078_vm9, %v1188_v37 }
 0x433   :  { %v1190_v35 = vmul.f32 %v3729_v39, %v4134_v55 }
 0x435   :  { %v3731_v42 = vpop.eup %3730  ;;  %3372 = vmatmul.mubr.msk.f32.gmra.mrb[16].mxu0 %vm1078_vm9, %v1190_v35 }
 0x436   :  { %v4167_v43 = vmul.f32 %v3731_v42, %v69_v41 }
 0x438   :  { %v3733_v46 = vpop.eup %3732  ;;  %v1624_v47 = vsel %vm1595_vm10, %v4167_v43, 0.0 }
 0x439   :  { %v3735_v54 = vpop.eup %3734  ;;  %1625 = vadd.xlane.f32.xlu0 %v1624_v47  ;;  %v4171_v58 = vmul.f32 %v3733_v46, %v70_v50 }
 0x43a   :  { %v4173_v59 = vmul.f32 %v3735_v54, %v71_v51 }
 0x43b   :  { %v1627_v55 = vsel %vm1595_vm10, %v4171_v58, 0.0 }
 0x43c   :  { %v3737_v63 = vpop.eup %3736  ;;  %1628 = vadd.xlane.f32.xlu1 %v1627_v55  ;;  %v1630_v0 = vsel %vm1595_vm10, %v4173_v59, 0.0 }
 0x43d   :  { %1631 = vadd.xlane.f32.xlu0 %v1630_v0  ;;  %v4179_v1 = vmul.f32 %v3737_v63, %v72_v61 }
 0x43f   :  { %v1633_v5 = vsel %vm1595_vm10, %v4179_v1, 0.0 }
 0x440   :  { %1634 = vadd.xlane.f32.xlu1 %v1633_v5 }
 0x4fc   :  { %v3364_v9 = vpop.f32.mrb[10].mxu0 }
 0x4fd   :  { %v1281_v14 = vpop.f32.mrb[11].mxu0  ;;  %v1321_v15 = vmul.f32 %v3364_v9, %v4016_v52 }
 0x4fe   :  { %v1320_v21 = vmul.f32 %v1281_v14, %v3996_v13 }
 0x500   :  { %v3367_v10 = vpop.f32.mrb[12].mxu0 }
 0x501   :  { %v1323_v17 = vmul.f32 %v3367_v10, %v4026_v56  ;;  %v1291_v19 = vpop.f32.mrb[13].mxu0  ;;  %v1626_v10 = vpop.xlane.xlu0 %1625 }
 0x502   :  { %v1322_v22 = vmul.f32 %v1291_v19, %v4018_v53  ;;  %vm1636_vm4 = vcmp.gt.f32.partialorder %v1626_v10, 0.0 }
 0x503   :  { %v1329_v32 = vadd.f32 %v1323_v17, %v1321_v15 }
 0x504   :  { %v1328_v23 = vadd.f32 %v1322_v22, %v1320_v21  ;;  %v3370_v26 = vpop.f32.mrb[14].mxu0  ;;  %v1629_v21 = vpop.xlane.xlu1 %1628 }
 0x505   :  { %v1325_v24 = vmul.f32 %v3370_v26, %v4037_v60  ;;  %v1301_v28 = vpop.f32.mrb[15].mxu0  ;;  %v1632_v26 = vpop.xlane.xlu0 %1631  ;;  %vm1637_vm5 = vcmp.gt.f32.partialorder %v1629_v21, 0.0 }
 0x506   :  { %v1324_v29 = vmul.f32 %v1301_v28, %v4029_v57  ;;  %vm1638_vm6 = vcmp.gt.f32.partialorder %v1632_v26, 0.0 }
 0x507   :  { %v1331_v30 = vadd.f32 %v1329_v32, %v1325_v24 }
 0x508   :  { %v1330_v31 = vadd.f32 %v1328_v23, %v1324_v29  ;;  %v3373_v8 = vpop.f32.mrb[16].mxu0  ;;  %v1640_v29 = vsel %vm1636_vm4, %v1626_v10, 1.0 }
 0x509   :  { %v1327_v52 = vmul.f32 %v3373_v8, %v4047_v3  ;;  %v1311_v36 = vpop.f32.mrb[17].mxu0 }
 0x50a   :  { %v1326_v56 = vmul.f32 %v1311_v36, %v4040_v62 }
 0x50b   :  { %v4191_v34 = vadd.f32 %v1331_v30, %v1327_v52 }
 0x50c   :  { %v4193_v13 = vadd.f32 %v1330_v31, %v1326_v56  ;;  %v1635_v31 = vpop.xlane.xlu1 %1634  ;;  %v1641_v56 = vsel %vm1637_vm5, %v1629_v21, 1.0 }
 0x50d   :  { %v4196_v53 = vmul.f32 0.70710677, %v4191_v34  ;;  %vm1639_vm11 = vcmp.gt.f32.partialorder %v1635_v31, 0.0 }
 0x50e   :  { %v4199_v60 = vmul.f32 0.70710677, %v4193_v13 }
 0x50f   :  { %v1339_v57 = vand.u32 2147483647, %v4196_v53  ;;  %vm1379_vm12 = vcmp.lt.f32.partialorder %v4196_v53, 0.0 }
 0x510   :  { %v1338_v37 = vand.u32 2147483647, %v4199_v60  ;;  %vm1378_vm13 = vcmp.lt.f32.partialorder %v4199_v60, 0.0 }
 0x511   :  { %v1341_v39 = vmul.f32 0.3275911, %v1339_v57  ;;  %v1367_v62 = vsub.f32 0.0, %v1339_v57 }
 0x512   :  { %v1340_v35 = vmul.f32 0.3275911, %v1338_v37  ;;  %v1366_v42 = vsub.f32 0.0, %v1338_v37 }
 0x513   :  { %v1343_v3 = vadd.f32 1.0, %v1341_v39  ;;  %v1369_v51 = vmul.f32 %v1367_v62, %v1339_v57  ;;  %v1642_v39 = vsel %vm1638_vm6, %v1632_v26, 1.0  ;;  %v1643_v62 = vsel %vm1639_vm11, %v1635_v31, 1.0 }
 0x514   :  { %v1342_v41 = vadd.f32 1.0, %v1340_v35  ;;  %v1368_v54 = vmul.f32 %v1366_v42, %v1338_v37  ;;  %vm2936_vm6 = vcmask 39936  }
 0x515   :  { %3738 = vrcp.f32 %v1343_v3  ;;  %v1372_v63 = vmul.f32 1.442695, %v1369_v51 }
 0x516   :  { %3740 = vrcp.f32 %v1342_v41  ;;  %v1370_v9 = vmul.f32 1.442695, %v1368_v54 }
 0x517   :  { %3742 = vpow2.f32 %v1372_v63 }
 0x518   :  { %3744 = vpow2.f32 %v1370_v9 }
 0x519   :  { %3746 = vrcp.f32 %v1640_v29  ;;  %v1479_v29 = vstv %s1478_s3 }
 0x51a   :  { %3748 = vrcp.f32 %v1641_v56 }
 0x51b   :  { %3750 = vrcp.f32 %v1642_v39 }
 0x51c   :  { %3752 = vrcp.f32 %v1643_v62 }
 0x51f   :  { %v3739_v50 = vpop.eup %3738 }
 0x520   :  { %v3741_v46 = vpop.eup %3740  ;;  %v1349_v47 = vmul.f32 1.0614054, %v3739_v50 }
 0x521   :  { %v1348_v61 = vmul.f32 1.0614054, %v3741_v46  ;;  %v3743_v36 = vpop.eup %3742 }
 0x522   :  { %v3016_v55 = vadd.f32 -1.4531521, %v1349_v47  ;;  %v3745_v37 = vpop.eup %3744 }
 0x523   :  { %v3015_v0 = vadd.f32 -1.4531521, %v1348_v61  ;;  %v1334_v61 = vmul.f32 0.5, %v4193_v13  ;;  %v3747_v63 = vpop.eup %3746 }
 0x524   :  { %v1353_v5 = vmul.f32 %v3739_v50, %v3016_v55  ;;  %v1645_v53 = vmul.f32 %v3747_v63, %v4167_v43 }
 0x525   :  { %v1352_v14 = vmul.f32 %v3741_v46, %v3015_v0  ;;  %v1335_v0 = vmul.f32 0.5, %v4191_v34 }
 0x526   :  { %v1355_v15 = vadd.f32 1.4214138, %v1353_v5 }
 0x527   :  { %v1354_v17 = vadd.f32 1.4214138, %v1352_v14  ;;  %v3749_v14 = vpop.eup %3748 }
 0x528   :  { %v1357_v19 = vmul.f32 %v3739_v50, %v1355_v15  ;;  %v3751_v10 = vpop.eup %3750  ;;  %v1647_v13 = vmul.f32 %v3749_v14, %v4171_v58  ;;  %v1873_v15 = vld [vmem:[#allocation2 + $0x2a8] sm:$0xff]  ;;  %v1874_v58 = vld [vmem:[#allocation2 + $0x2b0] sm:$0xff] }
 0x529   :  { %v1356_v22 = vmul.f32 %v3741_v46, %v1354_v17  ;;  %v3753_v60 = vpop.eup %3752  ;;  %v1649_v34 = vmul.f32 %v3751_v10, %v4173_v59  ;;  %v1783_v59 = vld [vmem:[#allocation2 + $0x188] sm:$0xff] }
 0x52a   :  { %v3018_v32 = vadd.f32 -0.28449672, %v1357_v19  ;;  %v1651_v43 = vmul.f32 %v3753_v60, %v4179_v1  ;;  %v1875_v19 = vld [vmem:[#allocation2 + $0x2b8] sm:$0xff] }
 0x52b   :  { %v3017_v23 = vadd.f32 -0.28449672, %v1356_v22  ;;  %v3631_v21 = vpack.c.bf16 %v1875_v19, %v1874_v58  ;;  %v1784_v22 = vld [vmem:[#allocation2 + $0x190] sm:$0xff] }
 0x52c   :  { %v1361_v24 = vmul.f32 %v3739_v50, %v3018_v32  ;;  %v3622_v1 = vpack.c.bf16 %v1784_v22, %v1783_v59  ;;  %v1785_v32 = vld [vmem:[#allocation2 + $0x198] sm:$0xff] }
 0x52d   :  { %v1360_v28 = vmul.f32 %v3741_v46, %v3017_v23  ;;  %v1786_v23 = vld [vmem:[#allocation2 + $0x1a0] sm:$0xff] }
 0x52e   :  { %v1363_v30 = vadd.f32 0.2548296, %v1361_v24  ;;  %v3625_v26 = vpack.c.bf16 %v1786_v23, %v1785_v32  ;;  %v3019_v24 = vld [vmem:[#allocation2 + $0x158] ss:$0 sm:$0xff] }
 0x52f   :  { %v1362_v8 = vadd.f32 0.2548296, %v1360_v28  ;;  %v1963_v32 = vld [vmem:[#allocation2 + $0x398] sm:$0xff] }
 0x530   :  { %v1365_v52 = vmul.f32 %v3739_v50, %v1363_v30  ;;  %v1483_v30 = vstv %s1482_s19  ;;  %v2044_v23 = vld [vmem:[#allocation2 + $0x3b8] sm:$0xff] }
 0x531   :  { %v1364_v57 = vmul.f32 %v3741_v46, %v1362_v8  ;;  %v1485_v56 = vmul.f32 %v1483_v30, %v3960_v45 }
 0x532   :  { %v1375_v35 = vmul.f32 %v3743_v36, %v1365_v52 }
 0x533   :  { %v1374_v3 = vmul.f32 %v3745_v37, %v1364_v57  ;;  %v1484_v37 = vmul.f32 %v1483_v30, %v3958_v44  ;;  %v1965_v30 = vld [vmem:[#allocation2 + $0x3a8] sm:$0xff] }
 0x534   :  { %v1377_v41 = vsub.f32 1.0, %v1375_v35 }
 0x535   :  { %v1376_v42 = vsub.f32 1.0, %v1374_v3 }
 0x536   :  { %v1381_v51 = vsub.f32 0.0, %v1377_v41 }
 0x537   :  { %v1380_v47 = vsub.f32 0.0, %v1376_v42 }
 0x538   :  { %v1383_v50 = vsel %vm1379_vm12, %v1381_v51, %v1377_v41 }
 0x539   :  { %v1385_v54 = vadd.f32 1.0, %v1383_v50  ;;  %v1382_v46 = vsel %vm1378_vm13, %v1380_v47, %v1376_v42 }
 0x53a   :  { %v1384_v55 = vadd.f32 1.0, %v1382_v46 }
 0x53b   :  { %v1387_v9 = vmul.f32 %v1385_v54, %v1335_v0 }
 0x53c   :  { %v1386_v5 = vmul.f32 %v1384_v55, %v1334_v61 }
 0x53e   :  { %3382 = vmatprep.mubr.msk.f32.mxu0 %vm274_vm7, %v1386_v5 }
 0x53f   :  { %3383 = vmatmul.mubr.msk.f32.vlgmr.msra.gmra.mrb[18].mxu0 %vm274_vm7, %v1387_v9 }
 0x540   :  { %3620 = vmatpush3.bf16.msra.mxu0 %v4002_v20  ;;  %3399 = vmatprep.mubr.msk.f32.mxu0 %vm1595_vm10, %v1645_v53  ;;  %v1872_v20 = vld [vmem:[#allocation2 + $0x2a0] sm:$0xff] }
 0x541   :  { %3621 = vmatprep.subr.bf16.mxu0 %v3885_v11  ;;  %v3627_v17 = vpack.c.bf16 %v1873_v15, %v1872_v20 }
 0x543   :  { %3400 = vmatmul.mubr.msk.f32.vlgmr.msra.gmra.mrb[20].mxu0 %vm1595_vm10, %v1647_v13  ;;  %3628 = vmatprep.subr.bf16.mxu1 %v3627_v17 }
 0x544   :  { %3402 = vmatprep.mubr.msk.f32.mxu0 %vm1595_vm10, %v1649_v34  ;;  %3630 = vmatpush3.bf16.msra.mxu1 %v3627_v17 }
 0x545   :  { %3632 = vmatprep.subr.bf16.mxu1 %v3631_v21  ;;  %3623 = vmatpush3.bf16.msra.mxu0 %v3622_v1  ;;  %v1962_v1 = vld [vmem:[#allocation2 + $0x390] sm:$0xff] }
 0x546   :  { %3624 = vmatprep.subr.bf16.mxu0 %v3885_v11 }
 0x547   :  { %3403 = vmatmul.mubr.msk.f32.gmra.mrb[22].mxu0 %vm1595_vm10, %v1651_v43 }
 0x548   :  { %3413 = vmatprep.mubr.msk.f32.mxu0 %vm3883_vm1, %v3882_v2  ;;  %3634 = vmatpush3.bf16.msra.mxu1 %v3631_v21 }
 0x549   :  { %3641 = vmatprep.subr.bf16.mxu1 %v3885_v11  ;;  %3626 = vmatpush3.bf16.msra.mxu0 %v3625_v26  ;;  %v3636_v26 = vpack.c.bf16 %v1963_v32, %v1962_v1 }
 0x54a   :  { %3635 = vmatprep.subr.bf16.mxu0 %v3885_v11 }
 0x612   :  { %v3384_v28 = vpop.f32.mrb[18].mxu0 }
 0x613   :  { %v1475_v31 = vadd.f32 %v3384_v28, %v3019_v24  ;;  %v1469_v8 = vpop.f32.mrb[19].mxu0 }
 0x614   :  { %v1470_v52 = vadd.f32 %v3019_v24, %v1469_v8  ;;  %v2045_v24 = vld [vmem:[#allocation2 + $0x3c0] sm:$0xff] }
 0x615   :  { %v1481_v36 = vmul.f32 %v1479_v29, %v1475_v31  ;;  %v3642_v28 = vpack.c.bf16 %v2045_v24, %v2044_v23  ;;  %v2046_v31 = vld [vmem:[#allocation2 + $0x3c8] sm:$0xff] }
 0x616   :  { %v1480_v57 = vmul.f32 %v1479_v29, %v1470_v52  ;;  %v3401_v39 = vpop.f32.mrb[20].mxu0  ;;  %v1964_v29 = vld [vmem:[#allocation2 + $0x3a0] sm:$0xff]  ;;  %v2047_v52 = vld [vmem:[#allocation2 + $0x3d0] sm:$0xff] }
 0x617   :  { %v4226_v35 = vadd.f32 %v1485_v56, %v1481_v36  ;;  %v1750_v3 = vmul.f32 %v3401_v39, %v4054_v7  ;;  %v1730_v41 = vpop.f32.mrb[21].mxu0  ;;  %v3639_v8 = vpack.c.bf16 %v1965_v30, %v1964_v29  ;;  %v3645_v36 = vpack.c.bf16 %v2047_v52, %v2046_v31  ;;  %v2124_v56 = vld [vmem:[#allocation2 + $0x3e8] sm:$0xff]  ;;  %v2208_v39 = vld [vmem:[#allocation2 + $0x410] sm:$0xff]  ;;  %v4268_v29 = vld [vmem:[#allocation2 + $0x98] sm:$0xff] }
 0x618   :  { %v4229_v62 = vadd.f32 %v1484_v37, %v1480_v57  ;;  %v1749_v42 = vmul.f32 %v1730_v41, %v4050_v4  ;;  %v2207_v57 = vld [vmem:[#allocation2 + $0x408] sm:$0xff]  ;;  %v3037_v41 = vld [vmem:[#allocation2 + $0x2c0] ss:$0 sm:$0xff] }
 0x619   :  { %v4272_v31 = vld [vmem:[#allocation2 + $0xa0] sm:$0xff] }
 0x61a   :  { %v1753_v51 = vadd.f32 %v1750_v3, %v1749_v42  ;;  %v3404_v47 = vpop.f32.mrb[22].mxu0  ;;  %3424 = vmatprep.mubr.msk.f32.mxu1 %vm274_vm7, %v4229_v62  ;;  %v3655_v3 = vpack.c.bf16 %v2208_v39, %v2207_v57 }
 0x61b   :  { %v1740_v50 = vpop.f32.mrb[23].mxu0  ;;  %3425 = vmatmul.mubr.msk.f32.vlgmr.msra.gmra.mrb[22].mxu1 %vm274_vm7, %v4226_v35  ;;  %v1752_v45 = vmul.f32 %v3404_v47, %v4063_v12  ;;  %v3034_v47 = vld [vmem:[#allocation2 + $0x1a8] ss:$0 sm:$0xff] }
 0x61c   :  { %v1751_v44 = vmul.f32 %v1740_v50, %v4058_v6  ;;  %3446 = vmatprep.mubr.msk.f32.mxu1 %vm3883_vm1, %v3882_v2  ;;  %3643 = vmatpush3.bf16.msra.mxu1 %v3642_v28 }
 0x61d   :  { %3644 = vmatprep.subr.bf16.mxu1 %v3885_v11 }
 0x61e   :  { %v1754_v7 = vadd.f32 %v1753_v51, %v1751_v44  ;;  %v1866_v44 = vstv %s3036_s20 }
 0x620   :  { %v1755_v54 = vadd.f32 %v1754_v7, %v1752_v45  ;;  %3646 = vmatpush3.bf16.msra.mxu1 %v3645_v36  ;;  %v1869_v45 = vstv %s1868_s21  ;;  %v4281_v36 = vld [vmem:[#allocation2 + $0xb0] sm:$0xff] }
 0x621   :  { %3656 = vmatprep.subr.bf16.mxu1 %v3655_v3 }
 0x622   :  { %v1757_v46 = vmul.f32 0.70710677, %v1755_v54  ;;  %v1756_v21 = vmul.f32 0.5, %v1755_v54 }
 0x624   :  { %v1758_v4 = vand.u32 2147483647, %v1757_v46  ;;  %vm1778_vm10 = vcmp.lt.f32.partialorder %v1757_v46, 0.0  ;;  %v2125_v46 = vld [vmem:[#allocation2 + $0x3f0] sm:$0xff] }
 0x626   :  { %v1759_v61 = vmul.f32 0.3275911, %v1758_v4  ;;  %v1772_v63 = vsub.f32 0.0, %v1758_v4 }
 0x628   :  { %v1760_v55 = vadd.f32 1.0, %v1759_v61  ;;  %v1773_v5 = vmul.f32 %v1772_v63, %v1758_v4  ;;  %v1870_v61 = vmul.f32 %v1869_v45, %v3954_v33  ;;  %v2209_v63 = vld [vmem:[#allocation2 + $0x418] sm:$0xff]  ;;  %v4254_v33 = vld [vmem:[#allocation2 + $0x90] sm:$0xff] }
 0x62a   :  { %3754 = vrcp.f32 %v1760_v55  ;;  %v1774_v53 = vmul.f32 1.442695, %v1773_v5  ;;  %v2126_v55 = vld [vmem:[#allocation2 + $0x3f8] sm:$0xff] }
 0x62c   :  { %3756 = vpow2.f32 %v1774_v53 }
 0x634   :  { %v3755_v0 = vpop.eup %3754 }
 0x635   :  { %v1763_v9 = vmul.f32 1.0614054, %v3755_v0 }
 0x636   :  { %v3757_v20 = vpop.eup %3756 }
 0x637   :  { %v3032_v14 = vadd.f32 -1.4531521, %v1763_v9  ;;  %v3651_v9 = vpack.c.bf16 %v2126_v55, %v2125_v46 }
 0x639   :  { %v1765_v10 = vmul.f32 %v3755_v0, %v3032_v14 }
 0x63b   :  { %v1766_v6 = vadd.f32 1.4214138, %v1765_v10 }
 0x63d   :  { %v1767_v13 = vmul.f32 %v3755_v0, %v1766_v6 }
 0x63f   :  { %v3033_v60 = vadd.f32 -0.28449672, %v1767_v13 }
 0x641   :  { %v1769_v34 = vmul.f32 %v3755_v0, %v3033_v60 }
 0x643   :  { %v1770_v12 = vadd.f32 0.2548296, %v1769_v34 }
 0x645   :  { %v1771_v43 = vmul.f32 %v3755_v0, %v1770_v12  ;;  %v2210_v0 = vld [vmem:[#allocation2 + $0x420] sm:$0xff]  ;;  %v3040_v12 = vld [vmem:[#allocation2 + $0x3b0] ss:$0 sm:$0xff] }
 0x646   :  { %v3659_v14 = vpack.c.bf16 %v2210_v0, %v2209_v63 }
 0x647   :  { %v1776_v15 = vmul.f32 %v3757_v20, %v1771_v43  ;;  %v3042_v43 = vld [vmem:[#allocation2 + $0x3d8] ss:$0 sm:$0xff]  ;;  %v3044_v20 = vld [vmem:[#allocation2 + $0x400] ss:$0 sm:$0xff] }
 0x649   :  { %v1777_v17 = vsub.f32 1.0, %v1776_v15  ;;  %v3047_v15 = vld [vmem:[#allocation2 + $0x428] ss:$0 sm:$0xff] }
 0x64b   :  { %v1779_v58 = vsub.f32 0.0, %v1777_v17 }
 0x64d   :  { %v1780_v19 = vsel %vm1778_vm10, %v1779_v58, %v1777_v17 }
 0x64e   :  { %v1781_v59 = vadd.f32 1.0, %v1780_v19 }
 0x650   :  { %v1782_v22 = vmul.f32 %v1781_v59, %v1756_v21 }
 0x652   :  { %3414 = vmatmul.mubr.msk.f32.vlgmr.msra.gmra.mrb[24].mxu0 %vm274_vm7, %v1782_v22 }
 0x653   :  { %3435 = vmatprep.mubr.msk.f32.mxu0 %vm3883_vm1, %v3882_v2  ;;  %3637 = vmatpush3.bf16.msra.mxu0 %v3636_v26  ;;  %v2123_v2 = vld [vmem:[#allocation2 + $0x3e0] sm:$0xff] }
 0x654   :  { %3638 = vmatprep.subr.bf16.mxu0 %v3885_v11  ;;  %v3647_v37 = vpack.c.bf16 %v2124_v56, %v2123_v2  ;;  %v4286_v56 = vld [vmem:[#allocation2 + $0xb8] sm:$0xff] }
 0x657   :  { %3640 = vmatpush3.bf16.msra.mxu0 %v3639_v8 }
 0x658   :  { %3648 = vmatprep.subr.bf16.mxu0 %v3647_v37 }
 0x6ee   :  { %v3426_v42 = vpop.f32.mrb[22].mxu1 }
 0x6ef   :  { %v4245_v51 = vadd.f32 %v3426_v42, %v3037_v41  ;;  %v1953_v11 = vpop.f32.mrb[23].mxu1 }
 0x6f0   :  { %v1954_v53 = vadd.f32 %v3037_v41, %v1953_v11 }
 0x6f1   :  { %v2292_v30 = vmul.f32 %v4268_v29, %v4245_v51  ;;  %v2294_v52 = vmul.f32 %v4277_v48, %v4245_v51  ;;  %v2296_v57 = vmul.f32 %v4286_v56, %v4245_v51 }
 0x6f2   :  { %v2291_v10 = vmul.f32 %v4254_v33, %v1954_v53  ;;  %v2293_v8 = vmul.f32 %v4272_v31, %v1954_v53  ;;  %v2295_v2 = vmul.f32 %v4281_v36, %v1954_v53 }
 0x725   :  { %v1861_v50 = vpop.f32.mrb[24].mxu0 }
 0x726   :  { %v1862_v7 = vadd.f32 %v3034_v47, %v1861_v50  ;;  %v3415_v54 = vpop.f32.mrb[25].mxu0 }
 0x728   :  { %v1867_v4 = vmul.f32 %v1866_v44, %v1862_v7 }
 0x72a   :  { %v1871_v5 = vadd.f32 %v1870_v61, %v1867_v4 }
 0x72c   :  { %3436 = vmatmul.mubr.msk.f32.vlgmr.msra.gmra.mrb[26].mxu0 %vm274_vm7, %v1871_v5  ;;  %3447 = vmatmul.mubr.msk.f32.vlgmr.msra.gmra.mrb[24].mxu1 %vm274_vm7, %v1871_v5 }
 0x72d   :  { %3650 = vmatpush3.bf16.msra.mxu0 %v3647_v37  ;;  %3658 = vmatpush3.bf16.msra.mxu1 %v3655_v3  ;;  %v4290_v37 = vld [vmem:[#allocation2 + $0xc0] sm:$0xff]  ;;  %v4295_v3 = vld [vmem:[#allocation2 + $0xc8] sm:$0xff] }
 0x72e   :  { %3457 = vmatprep.mubr.msk.f32.mxu0 %vm274_vm7, %v4229_v62  ;;  %3468 = vmatprep.mubr.msk.f32.mxu1 %vm274_vm7, %v4229_v62  ;;  %v2297_v39 = vmul.f32 %v4290_v37, %v1954_v53  ;;  %v2298_v41 = vmul.f32 %v4295_v3, %v4245_v51 }
 0x72f   :  { %3652 = vmatprep.subr.bf16.mxu0 %v3651_v9  ;;  %3660 = vmatprep.subr.bf16.mxu1 %v3659_v14 }
 0x731   :  { %3654 = vmatpush3.bf16.msra.mxu0 %v3651_v9  ;;  %3662 = vmatpush3.bf16.msra.mxu1 %v3659_v14 }
 0x734   :  { %3458 = vmatmul.mubr.msk.f32.vlgmr.msra.gmra.mrb[28].mxu0 %vm274_vm7, %v4226_v35  ;;  %3469 = vmatmul.mubr.msk.f32.vlgmr.msra.gmra.mrb[26].mxu1 %vm274_vm7, %v4226_v35 }
 0x735   :  { %3477 = vmatprep.mubr.msk.f32.mxu0 %vm274_vm7, %v2291_v10 }
 0x7ff   :  { %v2040_v6 = vpop.f32.mrb[26].mxu0  ;;  %v2119_v13 = vpop.f32.mrb[24].mxu1 }
 0x800   :  { %v3437_v60 = vpop.f32.mrb[27].mxu0  ;;  %v3448_v34 = vpop.f32.mrb[25].mxu1  ;;  %v2041_v59 = vadd.f32 %v3040_v12, %v2040_v6  ;;  %v2120_v22 = vadd.f32 %v3042_v43, %v2119_v13 }
 0x807   :  { %v3459_v17 = vpop.f32.mrb[28].mxu0  ;;  %v3470_v58 = vpop.f32.mrb[26].mxu1 }
 0x808   :  { %v2198_v19 = vpop.f32.mrb[29].mxu0  ;;  %v2282_v21 = vpop.f32.mrb[27].mxu1  ;;  %v2204_v24 = vadd.f32 %v3459_v17, %v3044_v20  ;;  %v2288_v28 = vadd.f32 %v3470_v58, %v3047_v15 }
 0x809   :  { %v2199_v1 = vadd.f32 %v3044_v20, %v2198_v19  ;;  %v2283_v32 = vadd.f32 %v3047_v15, %v2282_v21 }
 0x80b   :  { %v3663_v23 = vpack.c.bf16 %v2199_v1, %v2041_v59  ;;  %v3669_v26 = vpack.c.bf16 %v2283_v32, %v2120_v22 }
 0x80d   :  { %3665 = vmatprep.subr.msk.bf16.mxu0 %vm4007_vm8, %v3663_v23  ;;  %3670 = vmatprep.subr.bf16.mxu1 %v3669_v26 }
 0x80e   :  { %3668 = vmatpush3.bf16.xpose.msk.msra.mxu0 %vm4007_vm8, %v3663_v23  ;;  %3672 = vmatpush3.bf16.msra.mxu1 %v3669_v26 }
 0x80f   :  { %3475 = vmatprep.subr.msk.mxu0 %vm274_vm7, %v2204_v24  ;;  %3493 = vmatprep.subr.mxu1 %v2288_v28 }
 0x812   :  { %3494 = vmatpush3.msra.mxu1 %v2288_v28 }
 0x816   :  { %3476 = vmatpush3.xpose.msk.msra.mxu0 %vm274_vm7, %v2204_v24 }
 0x819   :  { %3478 = vmatmul.mubr.msk.f32.vlgmr.msra.gmra.mrb[30].mxu0 %vm274_vm7, %v2292_v30 }
 0x81a   :  { %3480 = vmatprep.mubr.msk.f32.mxu0 %vm274_vm7, %v2293_v8 }
 0x81d   :  { %3481 = vmatmul.mubr.msk.f32.gmra.mrb[32].mxu0 %vm274_vm7, %v2294_v52 }
 0x81e   :  { %3483 = vmatprep.mubr.msk.f32.mxu0 %vm274_vm7, %v2295_v2  ;;  %v3814_v2 = vld [vmem:[#allocation2 + $0x50] sm:$0xff] }
 0x821   :  { %3484 = vmatmul.mubr.msk.f32.gmra.mrb[34].mxu0 %vm274_vm7, %v2296_v57 }
 0x822   :  { %3486 = vmatprep.mubr.msk.f32.mxu0 %vm274_vm7, %v2297_v39 }
 0x825   :  { %3487 = vmatmul.mubr.msk.f32.gmra.mrb[36].mxu0 %vm274_vm7, %v2298_v41 }
 0x8ec   :  { %v3479_v42 = vpop.f32.mrb[30].mxu0 }
 0x8ed   :  { %v2398_v11 = vpop.f32.mrb[31].mxu0  ;;  %v2440_v47 = vsel %vm1078_vm9, %v3479_v42, -inf }
 0x8ee   :  { %2441 = vmax.xlane.f32.xlu1 %v2440_v47  ;;  %v2437_v50 = vsel %vm1078_vm9, %v2398_v11, -inf }
 0x8ef   :  { %2438 = vmax.xlane.f32.xlu0 %v2437_v50 }
 0x8f0   :  { %v3482_v44 = vpop.f32.mrb[32].mxu0 }
 0x8f1   :  { %v2408_v45 = vpop.f32.mrb[33].mxu0  ;;  %v2446_v7 = vsel %vm1078_vm9, %v3482_v44, -inf }
 0x8f2   :  { %2447 = vmax.xlane.f32.xlu1 %v2446_v7  ;;  %v2443_v54 = vsel %vm1078_vm9, %v2408_v45, -inf }
 0x8f3   :  { %2444 = vmax.xlane.f32.xlu0 %v2443_v54 }
 0x8f4   :  { %v3485_v46 = vpop.f32.mrb[34].mxu0 }
 0x8f5   :  { %v2418_v51 = vpop.f32.mrb[35].mxu0  ;;  %v2452_v4 = vsel %vm1078_vm9, %v3485_v46, -inf }
 0x8f6   :  { %2453 = vmax.xlane.f32.xlu1 %v2452_v4  ;;  %v2449_v61 = vsel %vm1078_vm9, %v2418_v51, -inf }
 0x8f7   :  { %2450 = vmax.xlane.f32.xlu0 %v2449_v61 }
 0x8f8   :  { %v3488_v55 = vpop.f32.mrb[36].mxu0 }
 0x8f9   :  { %v2428_v63 = vpop.f32.mrb[37].mxu0  ;;  %v2458_v0 = vsel %vm1078_vm9, %v3488_v55, -inf }
 0x8fa   :  { %2459 = vmax.xlane.f32.xlu1 %v2458_v0  ;;  %v2455_v5 = vsel %vm1078_vm9, %v2428_v63, -inf }
 0x8fb   :  { %2456 = vmax.xlane.f32.xlu0 %v2455_v5 }
 0x97b   :  { %v2442_v9 = vpop.xlane.xlu1 %2441 }
 0x97c   :  { %v2462_v14 = vsub.f32 %v3479_v42, %v2442_v9  ;;  %v2439_v53 = vpop.xlane.xlu0 %2438 }
 0x97d   :  { %v2461_v10 = vsub.f32 %v2398_v11, %v2439_v53 }
 0x97e   :  { %v2471_v6 = vmul.f32 1.442695, %v2462_v14 }
 0x97f   :  { %v2469_v13 = vmul.f32 1.442695, %v2461_v10  ;;  %v2448_v60 = vpop.xlane.xlu1 %2447 }
 0x980   :  { %3758 = vpow2.f32 %v2471_v6  ;;  %v2464_v34 = vsub.f32 %v3482_v44, %v2448_v60  ;;  %v2445_v12 = vpop.xlane.xlu0 %2444 }
 0x981   :  { %3760 = vpow2.f32 %v2469_v13  ;;  %v2463_v43 = vsub.f32 %v2408_v45, %v2445_v12 }
 0x982   :  { %v2475_v20 = vmul.f32 1.442695, %v2464_v34 }
 0x983   :  { %v2473_v15 = vmul.f32 1.442695, %v2463_v43  ;;  %v2454_v17 = vpop.xlane.xlu1 %2453 }
 0x984   :  { %3762 = vpow2.f32 %v2475_v20  ;;  %v2466_v58 = vsub.f32 %v3485_v46, %v2454_v17  ;;  %v2451_v19 = vpop.xlane.xlu0 %2450 }
 0x985   :  { %3764 = vpow2.f32 %v2473_v15  ;;  %v2465_v21 = vsub.f32 %v2418_v51, %v2451_v19 }
 0x986   :  { %v2479_v59 = vmul.f32 1.442695, %v2466_v58 }
 0x987   :  { %v2477_v22 = vmul.f32 1.442695, %v2465_v21  ;;  %v2460_v1 = vpop.xlane.xlu1 %2459 }
 0x988   :  { %3766 = vpow2.f32 %v2479_v59  ;;  %v2468_v32 = vsub.f32 %v3488_v55, %v2460_v1  ;;  %v2457_v23 = vpop.xlane.xlu0 %2456 }
 0x989   :  { %3768 = vpow2.f32 %v2477_v22  ;;  %v2467_v26 = vsub.f32 %v2428_v63, %v2457_v23 }
 0x98a   :  { %v3759_v24 = vpop.eup %3758  ;;  %v2483_v28 = vmul.f32 1.442695, %v2468_v32 }
 0x98b   :  { %v3761_v30 = vpop.eup %3760  ;;  %v2481_v8 = vmul.f32 1.442695, %v2467_v26  ;;  %v4309_v52 = vmul.f32 %v3759_v24, %v4087_v16 }
 0x98c   :  { %3770 = vpow2.f32 %v2483_v28  ;;  %v4311_v57 = vmul.f32 %v3814_v2, %v3761_v30  ;;  %v2746_v2 = vld [vmem:[#allocation2 + $0x2c8] sm:$0xff] }
 0x98d   :  { %3772 = vpow2.f32 %v2481_v8  ;;  %v2496_v39 = vsel %vm1078_vm9, %v4309_v52, 0.0 }
 0x98e   :  { %v3763_v41 = vpop.eup %3762  ;;  %2497 = vadd.xlane.f32.xlu1 %v2496_v39  ;;  %v2493_v42 = vsel %vm1078_vm9, %v4311_v57, 0.0 }
 0x98f   :  { %v3765_v11 = vpop.eup %3764  ;;  %2494 = vadd.xlane.f32.xlu0 %v2493_v42  ;;  %v4318_v47 = vmul.f32 %v3763_v41, %v4099_v25  ;;  %v2748_v41 = vld [vmem:[#allocation2 + $0x2d8] sm:$0xff]  ;;  %v2749_v42 = vld [vmem:[#allocation2 + $0x2e0] sm:$0xff] }
 0x990   :  { %v2487_v16 = vmul.f32 %v3765_v11, %v4091_v18  ;;  %v3677_v11 = vpack.c.bf16 %v2749_v42, %v2748_v41 }
 0x991   :  { %v2502_v50 = vsel %vm1078_vm9, %v4318_v47, 0.0 }
 0x992   :  { %v3767_v44 = vpop.eup %3766  ;;  %2503 = vadd.xlane.f32.xlu1 %v2502_v50  ;;  %v2499_v45 = vsel %vm1078_vm9, %v2487_v16, 0.0 }
 0x993   :  { %v3769_v7 = vpop.eup %3768  ;;  %2500 = vadd.xlane.f32.xlu0 %v2499_v45  ;;  %v2490_v54 = vmul.f32 %v3767_v44, %v4113_v38 }
 0x994   :  { %v2489_v46 = vmul.f32 %v3769_v7, %v4103_v27 }
 0x995   :  { %v2508_v51 = vsel %vm1078_vm9, %v2490_v54, 0.0 }
 0x996   :  { %v3771_v4 = vpop.eup %3770  ;;  %2509 = vadd.xlane.f32.xlu1 %v2508_v51  ;;  %v2505_v25 = vsel %vm1078_vm9, %v2489_v46, 0.0 }
 0x997   :  { %v3773_v18 = vpop.eup %3772  ;;  %2506 = vadd.xlane.f32.xlu0 %v2505_v25  ;;  %v2492_v61 = vmul.f32 %v3771_v4, %v4127_v49 }
 0x998   :  { %v2491_v55 = vmul.f32 %v3773_v18, %v4117_v40 }
 0x999   :  { %v2514_v63 = vsel %vm1078_vm9, %v2492_v61, 0.0 }
 0x99a   :  { %2515 = vadd.xlane.f32.xlu1 %v2514_v63  ;;  %v2511_v0 = vsel %vm1078_vm9, %v2491_v55, 0.0 }
 0x99b   :  { %2512 = vadd.xlane.f32.xlu0 %v2511_v0 }
 0xa1b   :  { %v2498_v38 = vpop.xlane.xlu1 %2497 }
 0xa1c   :  { %vm2518_vm1 = vcmp.gt.f32.partialorder %v2498_v38, 0.0  ;;  %v2495_v27 = vpop.xlane.xlu0 %2494 }
 0xa1d   :  { %v2526_v5 = vsel %vm2518_vm1, %v2498_v38, 1.0  ;;  %vm2517_vm8 = vcmp.gt.f32.partialorder %v2495_v27, 0.0 }
 0xa1e   :  { %3774 = vrcp.f32 %v2526_v5  ;;  %v2525_v9 = vsel %vm2517_vm8, %v2495_v27, 1.0 }
 0xa1f   :  { %3776 = vrcp.f32 %v2525_v9  ;;  %v2504_v14 = vpop.xlane.xlu1 %2503 }
 0xa20   :  { %vm2520_vm14 = vcmp.gt.f32.partialorder %v2504_v14, 0.0  ;;  %v2501_v53 = vpop.xlane.xlu0 %2500 }
 0xa21   :  { %v2528_v49 = vsel %vm2520_vm14, %v2504_v14, 1.0  ;;  %vm2519_vm15 = vcmp.gt.f32.partialorder %v2501_v53, 0.0 }
 0xa22   :  { %3778 = vrcp.f32 %v2528_v49  ;;  %v2527_v40 = vsel %vm2519_vm15, %v2501_v53, 1.0 }
 0xa23   :  { %3780 = vrcp.f32 %v2527_v40  ;;  %v2510_v10 = vpop.xlane.xlu1 %2509 }
 0xa24   :  { %vm2522_vm0 = vcmp.gt.f32.partialorder %v2510_v10, 0.0  ;;  %v2507_v6 = vpop.xlane.xlu0 %2506 }
 0xa25   :  { %v2530_v13 = vsel %vm2522_vm0, %v2510_v10, 1.0  ;;  %vm2521_vm2 = vcmp.gt.f32.partialorder %v2507_v6, 0.0 }
 0xa26   :  { %3782 = vrcp.f32 %v2530_v13  ;;  %v2529_v60 = vsel %vm2521_vm2, %v2507_v6, 1.0 }
 0xa27   :  { %3784 = vrcp.f32 %v2529_v60  ;;  %v2516_v34 = vpop.xlane.xlu1 %2515 }
 0xa28   :  { %v3775_v12 = vpop.eup %3774  ;;  %vm2524_vm3 = vcmp.gt.f32.partialorder %v2516_v34, 0.0  ;;  %v2513_v43 = vpop.xlane.xlu0 %2512 }
 0xa29   :  { %v3777_v20 = vpop.eup %3776  ;;  %v2532_v15 = vsel %vm2524_vm3, %v2516_v34, 1.0  ;;  %vm2523_vm4 = vcmp.gt.f32.partialorder %v2513_v43, 0.0  ;;  %v2536_v19 = vmul.f32 %v3775_v12, %v4309_v52 }
 0xa2a   :  { %3786 = vrcp.f32 %v2532_v15  ;;  %v2531_v17 = vsel %vm2523_vm4, %v2513_v43, 1.0  ;;  %v2534_v58 = vmul.f32 %v3777_v20, %v4311_v57  ;;  %v2747_v57 = vld [vmem:[#allocation2 + $0x2d0] sm:$0xff] }
 0xa2b   :  { %3788 = vrcp.f32 %v2531_v17  ;;  %v3673_v39 = vpack.c.bf16 %v2747_v57, %v2746_v2 }
 0xa2c   :  { %v3779_v21 = vpop.eup %3778  ;;  %3495 = vmatprep.mubr.msk.f32.mxu1 %vm1078_vm9, %v2534_v58 }
 0xa2d   :  { %v3781_v59 = vpop.eup %3780  ;;  %3496 = vmatmul.mubr.msk.f32.vlgmr.msra.gmra.mrb[28].mxu1 %vm1078_vm9, %v2536_v19  ;;  %v2540_v1 = vmul.f32 %v3779_v21, %v4318_v47  ;;  %3674 = vmatprep.subr.bf16.mxu1 %v3673_v39  ;;  %v2846_v47 = vld [vmem:[#allocation2 + $0x28] sm:$0xff] }
 0xa2e   :  { %v2538_v22 = vmul.f32 %v3781_v59, %v2487_v16  ;;  %3676 = vmatpush3.bf16.msra.mxu1 %v3673_v39  ;;  %v2847_v16 = vld [vmem:[#allocation2 + $0x30] sm:$0xff] }
 0xa2f   :  { %3678 = vmatprep.subr.bf16.mxu1 %v3677_v11  ;;  %v3681_v50 = vpack.c.bf16 %v2847_v16, %v2846_v47 }
 0xa30   :  { %v3783_v32 = vpop.eup %3782  ;;  %3498 = vmatprep.mubr.msk.f32.mxu1 %vm1078_vm9, %v2538_v22 }
 0xa31   :  { %v3785_v23 = vpop.eup %3784  ;;  %3499 = vmatmul.mubr.msk.f32.gmra.mrb[30].mxu1 %vm1078_vm9, %v2540_v1  ;;  %v2544_v24 = vmul.f32 %v3783_v32, %v2490_v54  ;;  %3682 = vmatprep.subr.bf16.mxu0 %v3681_v50 }
 0xa32   :  { %v2542_v26 = vmul.f32 %v3785_v23, %v2489_v46  ;;  %3680 = vmatpush3.bf16.msra.mxu1 %v3677_v11  ;;  %3684 = vmatpush3.bf16.msra.mxu0 %v3681_v50 }
 0xa34   :  { %v3787_v28 = vpop.eup %3786  ;;  %3501 = vmatprep.mubr.msk.f32.mxu1 %vm1078_vm9, %v2542_v26 }
 0xa35   :  { %v3789_v30 = vpop.eup %3788  ;;  %3502 = vmatmul.mubr.msk.f32.gmra.mrb[32].mxu1 %vm1078_vm9, %v2544_v24  ;;  %v2548_v52 = vmul.f32 %v3787_v28, %v2492_v61 }
 0xa36   :  { %v2546_v8 = vmul.f32 %v3789_v30, %v2491_v55 }
 0xa38   :  { %3504 = vmatprep.mubr.msk.f32.mxu1 %vm1078_vm9, %v2546_v8 }
 0xa39   :  { %3505 = vmatmul.mubr.msk.f32.gmra.mrb[34].mxu1 %vm1078_vm9, %v2548_v52 }
 0xb00   :  { %v3497_v44 = vpop.f32.mrb[28].mxu1 }
 0xb01   :  { %v2639_v45 = vpop.f32.mrb[29].mxu1  ;;  %v2679_v54 = vmul.f32 %v4268_v29, %v3497_v44 }
 0xb02   :  { %v2678_v4 = vmul.f32 %v4254_v33, %v2639_v45 }
 0xb04   :  { %v3500_v7 = vpop.f32.mrb[30].mxu1 }
 0xb05   :  { %v2681_v46 = vmul.f32 %v4277_v48, %v3500_v7  ;;  %v2649_v51 = vpop.f32.mrb[31].mxu1 }
 0xb06   :  { %v2680_v25 = vmul.f32 %v4272_v31, %v2649_v51 }
 0xb07   :  { %v2687_v18 = vadd.f32 %v2681_v46, %v2679_v54 }
 0xb08   :  { %v2686_v61 = vadd.f32 %v2680_v25, %v2678_v4  ;;  %v3503_v55 = vpop.f32.mrb[32].mxu1 }
 0xb09   :  { %v2683_v63 = vmul.f32 %v4286_v56, %v3503_v55  ;;  %v2659_v0 = vpop.f32.mrb[33].mxu1  ;;  %v2848_v55 = vld [vmem:[#allocation2 + $0x38] sm:$0xff] }
 0xb0a   :  { %v2682_v38 = vmul.f32 %v4281_v36, %v2659_v0 }
 0xb0b   :  { %v2689_v27 = vadd.f32 %v2687_v18, %v2683_v63  ;;  %v2849_v63 = vld [vmem:[#allocation2 + $0x40] sm:$0xff] }
 0xb0c   :  { %v2688_v5 = vadd.f32 %v2686_v61, %v2682_v38  ;;  %v3506_v9 = vpop.f32.mrb[34].mxu1  ;;  %v3685_v0 = vpack.c.bf16 %v2849_v63, %v2848_v55  ;;  %v3073_v38 = vld [vmem:[#allocation2 + $0x2e8] ss:$0 sm:$0xff] }
 0xb0d   :  { %v2685_v29 = vmul.f32 %v4295_v3, %v3506_v9  ;;  %v2669_v14 = vpop.f32.mrb[35].mxu1 }
 0xb0e   :  { %v2684_v48 = vmul.f32 %v4290_v37, %v2669_v14  ;;  %3686 = vmatprep.subr.bf16.mxu0 %v3685_v0 }
 0xb0f   :  { %v2691_v53 = vadd.f32 %v2689_v27, %v2685_v29  ;;  %3688 = vmatpush3.bf16.msra.mxu0 %v3685_v0  ;;  %v2841_v29 = vstv %s2840_s23 }
 0xb10   :  { %v2690_v33 = vadd.f32 %v2688_v5, %v2684_v48  ;;  %v2837_v5 = vstv %s3076_s22 }
 0xb11   :  { %v2695_v49 = vmul.f32 0.70710677, %v2691_v53  ;;  %v2693_v25 = vmul.f32 0.5, %v2691_v53 }
 0xb12   :  { %v2694_v31 = vmul.f32 0.70710677, %v2690_v33  ;;  %v2692_v51 = vmul.f32 0.5, %v2690_v33 }
 0xb13   :  { %v2697_v40 = vand.u32 2147483647, %v2695_v49  ;;  %vm2737_vm9 = vcmp.lt.f32.partialorder %v2695_v49, 0.0  ;;  %v2842_v49 = vmul.f32 %v2841_v29, %v4229_v62 }
 0xb14   :  { %v2696_v10 = vand.u32 2147483647, %v2694_v31  ;;  %vm2736_vm5 = vcmp.lt.f32.partialorder %v2694_v31, 0.0  ;;  %v2843_v31 = vmul.f32 %v2841_v29, %v4226_v35 }
 0xb15   :  { %v2699_v6 = vmul.f32 0.3275911, %v2697_v40  ;;  %v2725_v36 = vsub.f32 0.0, %v2697_v40 }
 0xb16   :  { %v2698_v13 = vmul.f32 0.3275911, %v2696_v10  ;;  %v2724_v34 = vsub.f32 0.0, %v2696_v10 }
 0xb17   :  { %v2701_v56 = vadd.f32 1.0, %v2699_v6  ;;  %v2727_v43 = vmul.f32 %v2725_v36, %v2697_v40  ;;  %v3077_v6 = vld [vmem:[#allocation2 + $0x48] ss:$0 sm:$0xff] }
 0xb18   :  { %v2700_v60 = vadd.f32 1.0, %v2698_v13  ;;  %v2726_v15 = vmul.f32 %v2724_v34, %v2696_v10 }
 0xb19   :  { %3790 = vrcp.f32 %v2701_v56  ;;  %v2730_v58 = vmul.f32 1.442695, %v2727_v43 }
 0xb1a   :  { %3792 = vrcp.f32 %v2700_v60  ;;  %v2728_v59 = vmul.f32 1.442695, %v2726_v15 }
 0xb1b   :  { %3794 = vpow2.f32 %v2730_v58 }
 0xb1c   :  { %3796 = vpow2.f32 %v2728_v59 }
 0xb23   :  { %v3791_v12 = vpop.eup %3790 }
 0xb24   :  { %v3793_v3 = vpop.eup %3792  ;;  %v2707_v20 = vmul.f32 1.0614054, %v3791_v12 }
 0xb25   :  { %v2706_v37 = vmul.f32 1.0614054, %v3793_v3  ;;  %v3795_v39 = vpop.eup %3794 }
 0xb26   :  { %v3070_v17 = vadd.f32 -1.4531521, %v2707_v20  ;;  %v3797_v42 = vpop.eup %3796 }
 0xb27   :  { %v3069_v19 = vadd.f32 -1.4531521, %v2706_v37 }
 0xb28   :  { %v2711_v21 = vmul.f32 %v3791_v12, %v3070_v17 }
 0xb29   :  { %v2710_v22 = vmul.f32 %v3793_v3, %v3069_v19 }
 0xb2a   :  { %v2713_v1 = vadd.f32 1.4214138, %v2711_v21 }
 0xb2b   :  { %v2712_v32 = vadd.f32 1.4214138, %v2710_v22 }
 0xb2c   :  { %v2715_v23 = vmul.f32 %v3791_v12, %v2713_v1 }
 0xb2d   :  { %v2714_v26 = vmul.f32 %v3793_v3, %v2712_v32 }
 0xb2e   :  { %v3072_v24 = vadd.f32 -0.28449672, %v2715_v23 }
 0xb2f   :  { %v3071_v28 = vadd.f32 -0.28449672, %v2714_v26 }
 0xb30   :  { %v2719_v30 = vmul.f32 %v3791_v12, %v3072_v24 }
 0xb31   :  { %v2718_v8 = vmul.f32 %v3793_v3, %v3071_v28 }
 0xb32   :  { %v2721_v52 = vadd.f32 0.2548296, %v2719_v30 }
 0xb33   :  { %v2720_v2 = vadd.f32 0.2548296, %v2718_v8 }
 0xb34   :  { %v2723_v57 = vmul.f32 %v3791_v12, %v2721_v52 }
 0xb35   :  { %v2722_v41 = vmul.f32 %v3793_v3, %v2720_v2 }
 0xb36   :  { %v2733_v11 = vmul.f32 %v3795_v39, %v2723_v57 }
 0xb37   :  { %v2732_v47 = vmul.f32 %v3797_v42, %v2722_v41 }
 0xb38   :  { %v2735_v16 = vsub.f32 1.0, %v2733_v11 }
 0xb39   :  { %v2734_v50 = vsub.f32 1.0, %v2732_v47 }
 0xb3a   :  { %v2739_v44 = vsub.f32 0.0, %v2735_v16 }
 0xb3b   :  { %v2738_v45 = vsub.f32 0.0, %v2734_v50 }
 0xb3c   :  { %v2741_v7 = vsel %vm2737_vm9, %v2739_v44, %v2735_v16 }
 0xb3d   :  { %v2743_v54 = vadd.f32 1.0, %v2741_v7  ;;  %v2740_v46 = vsel %vm2736_vm5, %v2738_v45, %v2734_v50 }
 0xb3e   :  { %v2742_v4 = vadd.f32 1.0, %v2740_v46 }
 0xb3f   :  { %v2745_v61 = vmul.f32 %v2743_v54, %v2693_v25 }
 0xb40   :  { %v2744_v18 = vmul.f32 %v2742_v4, %v2692_v51 }
 0xb42   :  { %3515 = vmatprep.mubr.msk.f32.mxu1 %vm274_vm7, %v2744_v18 }
 0xb43   :  { %3516 = vmatmul.mubr.msk.f32.vlgmr.msra.gmra.mrb[36].mxu1 %vm274_vm7, %v2745_v61 }
 0xc16   :  { %v3517_v27 = vpop.f32.mrb[36].mxu1 }
 0xc17   :  { %v2833_v9 = vadd.f32 %v3517_v27, %v3073_v38  ;;  %v2827_v14 = vpop.f32.mrb[37].mxu1 }
 0xc18   :  { %v2828_v48 = vadd.f32 %v3073_v38, %v2827_v14 }
 0xc19   :  { %v2839_v53 = vmul.f32 %v2837_v5, %v2833_v9 }
 0xc1a   :  { %v2838_v33 = vmul.f32 %v2837_v5, %v2828_v48 }
 0xc1b   :  { %v2845_v10 = vadd.f32 %v2843_v31, %v2839_v53 }
 0xc1c   :  { %v2844_v40 = vadd.f32 %v2842_v49, %v2838_v33 }
 0xc1e   :  { %3526 = vmatprep.mubr.msk.f32.mxu0 %vm274_vm7, %v2844_v40 }
 0xc1f   :  { %3527 = vmatmul.mubr.msk.f32.vlgmr.msra.gmra.mrb[38].mxu0 %vm274_vm7, %v2845_v10 }
 0xcf2   :  { %v3528_v13 = vpop.f32.mrb[38].mxu0 }
 0xcf3   :  { %v2933_v56 = vadd.f32 %v3528_v13, %v3077_v6  ;;  %v2927_v60 = vpop.f32.mrb[39].mxu0 }
 0xcf4   :  { %v2928_v36 = vadd.f32 %v3077_v6, %v2927_v60 }
 0xcf5   :  { %v2940_v34 = vsel %vm2936_vm6, %v2933_v56, -inf }
 0xcf6   :  { %2941 = vmax.xlane.f32.xlu1 %v2940_v34  ;;  %v2937_v12 = vsel %vm2936_vm6, %v2928_v36, -inf }
 0xcf7   :  { %2938 = vmax.xlane.f32.xlu0 %v2937_v12 }
 0xd83   :  { %v2942_v62 = vpop.xlane.xlu1 %2941 }
 0xd84   :  { %v2944_v35 = vsub.f32 %v2933_v56, %v2942_v62  ;;  %v2939_v43 = vpop.xlane.xlu0 %2938 }
 0xd85   :  { %v2943_v3 = vsub.f32 %v2928_v36, %v2939_v43 }
 0xd86   :  { %v2947_v20 = vmul.f32 1.442695, %v2944_v35 }
 0xd87   :  { %v2945_v15 = vmul.f32 1.442695, %v2943_v3 }
 0xd88   :  { %3798 = vpow2.f32 %v2947_v20 }
 0xd89   :  { %3800 = vpow2.f32 %v2945_v15 }
 0xd92   :  { %v3799_v37 = vpop.eup %3798 }
 0xd93   :  { %v3801_v17 = vpop.eup %3800  ;;  %v2952_v58 = vsel %vm2936_vm6, %v3799_v37, 0.0 }
 0xd94   :  { %2953 = vadd.xlane.f32.xlu1 %v2952_v58  ;;  %v2949_v19 = vsel %vm2936_vm6, %v3801_v17, 0.0 }
 0xd95   :  { %2950 = vadd.xlane.f32.xlu0 %v2949_v19 }
 0xe21   :  { %v2954_v21 = vpop.xlane.xlu1 %2953 }
 0xe22   :  { %3802 = vrcp.f32 %v2954_v21  ;;  %v2951_v59 = vpop.xlane.xlu0 %2950 }
 0xe23   :  { %3804 = vrcp.f32 %v2951_v59 }
 0xe2c   :  { %v3803_v22 = vpop.eup %3802 }
 0xe2d   :  { %v3805_v1 = vpop.eup %3804  ;;  %v2958_v32 = vmul.f32 %v3803_v22, %v3799_v37 }
 0xe2e   :  { %v2956_v23 = vmul.f32 %v3805_v1, %v3801_v17 }
 0xe2f   :  { %2960 = vst.msk [vmem:[%s4373_s4 + $0x8] sm:$0xff] %vm2936_vm6, %v2958_v32 }
 0xe30   :  { %2959 = vst.msk [vmem:[%s4373_s4] sm:$0xff] %vm2936_vm6, %v2956_v23 }
 0xe31   :  { %2965 = vsyncpa [#allocation3], 1 }
 0xe32   :  { %2966 = vsyncpa [#allocation7], 1 }
 0xe33   :  { %2967 = vsyncpa [#allocation4], 1 }

</bundles_post_ra>
